<compile_context>
chip_gen: v7x
topology: tpu7x:2x2x1
jax: 0.10.0
libtpu: 0.0.40
codegen_flags: <defaults>
</compile_context>

<pallas_src>
import functools

import jax
import jax.numpy as jnp
from jax import lax
from jax.experimental import pallas as pl
from jax.experimental.pallas import tpu as pltpu

# Module hyper-parameters (defaults from the PyTorch script).
VOCAB = 256
EMBED = 16
NUM_LAYERS = 2
CHANNELS = 64
KSZ = 3
WINDOW = 4
FB_DIM = 32
LN_EPS = 1e-5                                   # nn.LayerNorm default
HIDDEN_PAD = ((CHANNELS + 127) // 128) * 128    # lane-dense final-hidden store
TAPW = 128                                      # per-tap lane group (>= CHANNELS)


def wave_feedback_kernel(
    tok_ref, fb_ref, emb_ref,
    wc0_ref, bc0_ref, g0_ref, be0_ref,
    wc1_ref, bc1_ref, g1_ref, be1_ref,
    w_post_ref, b_post_ref, w_fb_ref, b_fb_ref,
    w_po_ref, w_fbo_ref, bias_out_ref,
    logits_ref, hidden_ref,
):
    bb, T, V = logits_ref.shape
    C = w_post_ref.shape[0]
    vocab = emb_ref.shape[0]
    K = wc0_ref.shape[1] // TAPW
    M = bb * T
    md = emb_ref.dtype          # matmul-operand dtype (f32 or bf16)

    # ---- fused embedding + input_proj: one one-hot MXU matmul ---------------
    # (out-of-range token ids map to an all-zero row; nn.Embedding would error)
    tok = tok_ref[...]                                          # [M, 1] int32
    iota_v = lax.broadcasted_iota(jnp.int32, (M, vocab), 1)
    onehot = (iota_v == tok).astype(md)                         # [M, vocab]
    x = jnp.dot(onehot, emb_ref[...],
                preferred_element_type=jnp.float32)             # [M, C] f32

    # time index within each batch row (hoisted; reused by both blocks)
    t_idx = lax.broadcasted_iota(jnp.int32, (M, 1), 0) % T      # [M, 1]

    def residual_block(x, wc_ref, bc_ref, g_ref, be_ref, dilation):
        # Causal dilated conv: one wide matmul over all K taps (each tap padded
        # to a 128-lane group), then per-tap outputs are shift-accumulated in
        # registers via pltpu.roll (XLU) + time mask — no scratch stores.
        y = jnp.dot(x.astype(md), wc_ref[...],
                    preferred_element_type=jnp.float32)         # [M, K*TAPW]
        acc = y[:, (K - 1) * TAPW:(K - 1) * TAPW + C]           # shift == 0 tap
        for k in range(K - 1):
            s = (K - 1 - k) * dilation
            if s >= T:
                continue                                        # fully out of range
            yk = y[:, k * TAPW:k * TAPW + C]                    # lane-aligned slice
            rolled = pltpu.roll(yk, shift=s, axis=0)            # out[t] = yk[t - s]
            acc = acc + jnp.where(t_idx >= s, rolled, 0.0)
        out = acc + bc_ref[...]
        # LayerNorm over channels (f32): var = E[x^2] - E[x]^2, affine, ReLU, +res.
        mean = jnp.mean(out, axis=-1, keepdims=True)
        meansq = jnp.mean(out * out, axis=-1, keepdims=True)
        var = jnp.maximum(meansq - mean * mean, 0.0)
        normed = (out - mean) * lax.rsqrt(var + LN_EPS)
        normed = normed * g_ref[...] + be_ref[...]
        return x + jnp.maximum(normed, 0.0)

    x = residual_block(x, wc0_ref, bc0_ref, g0_ref, be0_ref, 1)
    x = residual_block(x, wc1_ref, bc1_ref, g1_ref, be1_ref, 2)

    # ---- logits: post_conv folded into output_proj ---------------------------
    fb = fb_ref[...]                                             # [bb, W*FB] f32
    fb_md = fb.astype(md)
    fbv = jnp.dot(fb_md, w_fbo_ref[...],
                  preferred_element_type=jnp.float32) + bias_out_ref[...]   # [bb, V]
    out = jnp.dot(x.astype(md), w_po_ref[...],
                  preferred_element_type=jnp.float32)            # [M, V]
    out3 = out.reshape(bb, T, V) + fbv[:, None, :]               # [bb, T, V]
    m = jnp.max(out3, axis=-1, keepdims=True)
    shifted = out3 - m
    lse = jnp.log(jnp.sum(jnp.exp(shifted), axis=-1, keepdims=True))
    logits_ref[...] = shifted - lse

    # ---- final hidden state: tiny matmul on the last time row only -----------
    x_last = x.reshape(bb, T, C)[:, T - 1, :]                    # [bb, C]
    fb_feats = jnp.dot(fb_md, w_fb_ref[...],
                       preferred_element_type=jnp.float32) + b_fb_ref[...]
    hid = (jnp.dot(x_last.astype(md), w_post_ref[...],
                   preferred_element_type=jnp.float32)
           + b_post_ref[...] + fb_feats)                         # [bb, C]
    pad = hidden_ref.shape[-1] - C
    if pad > 0:
        hid = jnp.concatenate([hid, jnp.zeros((bb, pad), jnp.float32)], axis=-1)
    hidden_ref[...] = hid


def _pinned_spec(arr):
    """Full-array block with a constant index_map: fetched once, pinned in VMEM."""
    nd = arr.ndim
    return pl.BlockSpec(arr.shape, lambda i, _nd=nd: (0,) * _nd)


def _tpu_kind():
    try:
        return jax.devices()[0].device_kind.lower()
    except Exception:
        return "unknown"


def _vmem_budgets(kind):
    """(block-selection budget, vmem_limit_bytes) per TPU generation."""
    if "v5" in kind or "v6" in kind:          # 128 MiB physical VMEM
        return 64 * 1024 * 1024, 100 * 1024 * 1024
    return 24 * 1024 * 1024, 48 * 1024 * 1024  # v7x (64 MiB/TC) / unknown: safe


def _choose_b_block(B, T, md, budget_bytes, prefer_multi_step):
    """Largest legal batch block whose working set fits the VMEM budget."""
    it = jnp.dtype(md).itemsize

    def est(bb):
        m = bb * T
        io = m * 4                                   # token ids
        io += bb * WINDOW * FB_DIM * 4               # fb window
        io += bb * T * VOCAB * 4                     # logits block
        io += bb * HIDDEN_PAD * 4                    # hidden block
        io *= 2                                      # double-buffered pipeline
        work = m * VOCAB * (it + 3 * 4)              # onehot + live [M,V] f32 softmax temps
        work += m * KSZ * TAPW * 4                   # conv tap outputs
        work += m * CHANNELS * 4 * 6                 # x / acc / normed / residual temps
        weights = 2 * 1024 * 1024                    # pinned weights + headroom
        return io + work + weights

    # (8,128) legality: fb/hidden blocks are (bb, 128) so bb must be a multiple
    # of 8 or equal B. T is assumed a multiple of 8 for dense stores (perf only).
    legal = [bb for bb in range(1, B + 1)
             if B % bb == 0 and (bb == B or bb % 8 == 0)]
    fits = [bb for bb in legal if est(bb) <= budget_bytes]
    if not fits:
        # TODO(synk): T-tiling with a (KSZ-1)*max_dilation halo instead of failing.
        raise ValueError(
            f"No legal batch block fits the VMEM budget ({budget_bytes} B) for "
            f"B={B}, T={T}; sequence tiling is not implemented yet.")
    if prefer_multi_step:
        multi = [bb for bb in fits if B // bb >= 2]   # keep both v7x TCs busy
        if multi:
            return max(multi)
    return max(fits)


@functools.partial(jax.jit, static_argnames=("matmul_dtype",))
def wave_feedback_forward(tokens, fb_window, params, matmul_dtype=jnp.float32):
    """tokens: [B, T] int, fb_window: [B, WINDOW, FB_DIM] f32.
    Returns (log_softmax logits [B, T, VOCAB], final_hidden [B, CHANNELS])."""
    B, T = tokens.shape
    md = matmul_dtype
    kind = _tpu_kind()
    budget, vmem_limit = _vmem_budgets(kind)
    b_block = _choose_b_block(B, T, md, budget, prefer_multi_step=("v7" in kind))
    grid = (B // b_block,)

    tok_flat = tokens.reshape(B * T, 1).astype(jnp.int32)
    fb_flat = fb_window.reshape(B, WINDOW * FB_DIM).astype(jnp.float32)

    def wq(a):                                  # MXU operands in matmul dtype
        return a.astype(md)

    def pack_taps(wc):                          # [K, C_in, C_out] -> [C_in, K*TAPW]
        wc_p = jnp.pad(wc, ((0, 0), (0, 0), (0, TAPW - CHANNELS)))
        return jnp.transpose(wc_p, (1, 0, 2)).reshape(CHANNELS, KSZ * TAPW)

    # Algebraic folds (all done in f32, then quantized for the MXU path):
    emb_fused = params["embedding"] @ params["w_in"] + params["b_in"]          # [V, C]
    w_po = params["w_post"] @ params["w_out"]                                  # [C, V]
    w_fbo = params["w_fb"] @ params["w_out"]                                   # [W*FB, V]
    bias_out = (params["b_post"] + params["b_fb"]) @ params["w_out"] + params["b_out"]  # [1, V]

    inputs = (
        tok_flat, fb_flat,
        wq(emb_fused),
        wq(pack_taps(params["wc0"])), params["bc0"], params["g0"], params["be0"],
        wq(pack_taps(params["wc1"])), params["bc1"], params["g1"], params["be1"],
        wq(params["w_post"]), params["b_post"],
        wq(params["w_fb"]), params["b_fb"],
        wq(w_po), wq(w_fbo), bias_out,
    )

    in_specs = [
        pl.BlockSpec((b_block * T, 1), lambda i: (i, 0)),            # token ids
        pl.BlockSpec((b_block, WINDOW * FB_DIM), lambda i: (i, 0)),  # fb window
    ] + [_pinned_spec(a) for a in inputs[2:]]                        # weights

    out_specs = (
        pl.BlockSpec((b_block, T, VOCAB), lambda i: (i, 0, 0)),
        pl.BlockSpec((b_block, HIDDEN_PAD), lambda i: (i, 0)),
    )
    out_shape = (
        jax.ShapeDtypeStruct((B, T, VOCAB), jnp.float32),
        jax.ShapeDtypeStruct((B, HIDDEN_PAD), jnp.float32),
    )

    grid_spec = pltpu.PrefetchScalarGridSpec(
        num_scalar_prefetch=0,
        grid=grid,
        in_specs=in_specs,
        out_specs=out_specs,
    )

    logits, hidden_pad = pl.pallas_call(
        wave_feedback_kernel,
        out_shape=out_shape,
        grid_spec=grid_spec,
        compiler_params=pltpu.CompilerParams(
            dimension_semantics=("parallel",),      # batch blocks -> megacore
            vmem_limit_bytes=vmem_limit,
        ),
    )(*inputs)
    return logits, hidden_pad[:, :CHANNELS]


def reference_forward(tokens, fb_window, params):
    """Plain-JAX f32 reference with the original module's factorization."""
    B, T = tokens.shape
    emb = jnp.take(params["embedding"], tokens, axis=0)
    x = emb @ params["w_in"] + params["b_in"].reshape(1, 1, -1)

    def block(x, wc, bc, g, be, dil):
        out = jnp.zeros_like(x)
        K = wc.shape[0]
        for k in range(K):
            shift = (K - 1 - k) * dil
            xs = x if shift == 0 else jnp.pad(x, ((0, 0), (shift, 0), (0, 0)))[:, :T, :]
            out = out + xs @ wc[k]
        out = out + bc.reshape(1, 1, -1)
        mean = out.mean(-1, keepdims=True)
        var = ((out - mean) ** 2).mean(-1, keepdims=True)
        normed = (out - mean) / jnp.sqrt(var + LN_EPS)
        normed = normed * g.reshape(1, 1, -1) + be.reshape(1, 1, -1)
        return x + jnp.maximum(normed, 0.0)

    x = block(x, params["wc0"], params["bc0"], params["g0"], params["be0"], 1)
    x = block(x, params["wc1"], params["bc1"], params["g1"], params["be1"], 2)
    x = x @ params["w_post"] + params["b_post"].reshape(1, 1, -1)
    fb = fb_window.reshape(B, -1) @ params["w_fb"] + params["b_fb"]
    combined = x + fb[:, None, :]
    out = combined @ params["w_out"] + params["b_out"].reshape(1, 1, -1)
    return jax.nn.log_softmax(out, axis=-1), combined[:, -1, :]


if __name__ == "__main__":
    B, T = 2, 8
    key = jax.random.PRNGKey(0)
    keys = jax.random.split(key, 20)

    def rnd(k, shape, scale=0.05):
        return jax.random.normal(k, shape, dtype=jnp.float32) * scale

    params = {
        "embedding": rnd(keys[0], (VOCAB, EMBED), 0.1),
        "w_in": rnd(keys[1], (EMBED, CHANNELS)),
        "b_in": rnd(keys[2], (1, CHANNELS)),
        "wc0": rnd(keys[3], (KSZ, CHANNELS, CHANNELS)),      # dilation 1, [k, in, out]
        "bc0": rnd(keys[4], (1, CHANNELS)),
        "g0": jnp.ones((1, CHANNELS), jnp.float32),
        "be0": jnp.zeros((1, CHANNELS), jnp.float32),
        "wc1": rnd(keys[5], (KSZ, CHANNELS, CHANNELS)),      # dilation 2
        "bc1": rnd(keys[6], (1, CHANNELS)),
        "g1": jnp.ones((1, CHANNELS), jnp.float32),
        "be1": jnp.zeros((1, CHANNELS), jnp.float32),
        "w_post": rnd(keys[7], (CHANNELS, CHANNELS)),
        "b_post": rnd(keys[8], (1, CHANNELS)),
        "w_fb": rnd(keys[9], (WINDOW * FB_DIM, CHANNELS)),
        "b_fb": rnd(keys[10], (1, CHANNELS)),
        "w_out": rnd(keys[11], (CHANNELS, VOCAB)),
        "b_out": rnd(keys[12], (1, VOCAB)),
        # fb_extractor (nn.Linear(channels, fb_dim, bias=False)) is unused in forward().
        "w_fb_extract": rnd(keys[15], (CHANNELS, FB_DIM)),
    }

    tokens = jax.random.randint(keys[13], (B, T), 0, VOCAB)
    fb_window = rnd(keys[14], (B, WINDOW, FB_DIM), 0.1)

    ref_logits, ref_hidden = reference_forward(tokens, fb_window, params)

    # ---- f32-operand run (exact module semantics up to matmul reassociation) --
    logits, hidden = wave_feedback_forward(tokens, fb_window, params,
                                           matmul_dtype=jnp.float32)
    jax.block_until_ready((logits, hidden))
    assert logits.shape == (B, T, VOCAB) and hidden.shape == (B, CHANNELS)
    assert jnp.allclose(logits, ref_logits, atol=5e-3, rtol=5e-3)
    assert jnp.allclose(hidden, ref_hidden, atol=5e-3, rtol=5e-3)

    # ---- bf16-MXU run (fast path on v5e/v6e/v7x): f32 accumulation, f32 LN/softmax
    logits_bf, hidden_bf = wave_feedback_forward(tokens, fb_window, params,
                                                 matmul_dtype=jnp.bfloat16)
    jax.block_until_ready((logits_bf, hidden_bf))
    assert jnp.allclose(logits_bf, ref_logits, atol=1e-1, rtol=1e-1)
    assert jnp.allclose(hidden_bf, ref_hidden, atol=1e-1, rtol=1e-1)

    print("KERNEL_OK")
</pallas_src>

<mosaic_0001>
module attributes {stable_mosaic.version = 11 : i64} {
  func.func @wave_feedback_kernel(%arg0: i32, %arg1: memref<16x1xi32, #tpu.memory_space<vmem>>, %arg2: memref<2x128xf32, #tpu.memory_space<vmem>>, %arg3: memref<256x64xf32, #tpu.memory_space<vmem>>, %arg4: memref<64x384xf32, #tpu.memory_space<vmem>>, %arg5: memref<1x64xf32, #tpu.memory_space<vmem>>, %arg6: memref<1x64xf32, #tpu.memory_space<vmem>>, %arg7: memref<1x64xf32, #tpu.memory_space<vmem>>, %arg8: memref<64x384xf32, #tpu.memory_space<vmem>>, %arg9: memref<1x64xf32, #tpu.memory_space<vmem>>, %arg10: memref<1x64xf32, #tpu.memory_space<vmem>>, %arg11: memref<1x64xf32, #tpu.memory_space<vmem>>, %arg12: memref<64x64xf32, #tpu.memory_space<vmem>>, %arg13: memref<1x64xf32, #tpu.memory_space<vmem>>, %arg14: memref<128x64xf32, #tpu.memory_space<vmem>>, %arg15: memref<1x64xf32, #tpu.memory_space<vmem>>, %arg16: memref<64x256xf32, #tpu.memory_space<vmem>>, %arg17: memref<128x256xf32, #tpu.memory_space<vmem>>, %arg18: memref<1x256xf32, #tpu.memory_space<vmem>>, %arg19: memref<2x8x256xf32, #tpu.memory_space<vmem>>, %arg20: memref<2x128xf32, #tpu.memory_space<vmem>>) attributes {dimension_semantics = [#tpu.dimension_semantics<parallel>], iteration_bounds = array<i64: 1>, scalar_prefetch = 0 : i64, scratch_operands = 0 : i64, tpu.core_type = #tpu.core_type<tc>, window_params = [{transform_indices = @transform_0, window_bounds = array<i64: 16, 1>}, {transform_indices = @transform_1, window_bounds = array<i64: 2, 128>}, {pipeline_mode = #tpu.pipeline_mode<synchronous>, transform_indices = @transform_2, window_bounds = array<i64: 256, 64>}, {pipeline_mode = #tpu.pipeline_mode<synchronous>, transform_indices = @transform_3, window_bounds = array<i64: 64, 384>}, {pipeline_mode = #tpu.pipeline_mode<synchronous>, transform_indices = @transform_4, window_bounds = array<i64: 1, 64>}, {pipeline_mode = #tpu.pipeline_mode<synchronous>, transform_indices = @transform_5, window_bounds = array<i64: 1, 64>}, {pipeline_mode = #tpu.pipeline_mode<synchronous>, transform_indices = @transform_6, window_bounds = array<i64: 1, 64>}, {pipeline_mode = #tpu.pipeline_mode<synchronous>, transform_indices = @transform_7, window_bounds = array<i64: 64, 384>}, {pipeline_mode = #tpu.pipeline_mode<synchronous>, transform_indices = @transform_8, window_bounds = array<i64: 1, 64>}, {pipeline_mode = #tpu.pipeline_mode<synchronous>, transform_indices = @transform_9, window_bounds = array<i64: 1, 64>}, {pipeline_mode = #tpu.pipeline_mode<synchronous>, transform_indices = @transform_10, window_bounds = array<i64: 1, 64>}, {pipeline_mode = #tpu.pipeline_mode<synchronous>, transform_indices = @transform_11, window_bounds = array<i64: 64, 64>}, {pipeline_mode = #tpu.pipeline_mode<synchronous>, transform_indices = @transform_12, window_bounds = array<i64: 1, 64>}, {pipeline_mode = #tpu.pipeline_mode<synchronous>, transform_indices = @transform_13, window_bounds = array<i64: 128, 64>}, {pipeline_mode = #tpu.pipeline_mode<synchronous>, transform_indices = @transform_14, window_bounds = array<i64: 1, 64>}, {pipeline_mode = #tpu.pipeline_mode<synchronous>, transform_indices = @transform_15, window_bounds = array<i64: 64, 256>}, {pipeline_mode = #tpu.pipeline_mode<synchronous>, transform_indices = @transform_16, window_bounds = array<i64: 128, 256>}, {pipeline_mode = #tpu.pipeline_mode<synchronous>, transform_indices = @transform_17, window_bounds = array<i64: 1, 256>}, {transform_indices = @transform_18, window_bounds = array<i64: 2, 8, 256>}, {transform_indices = @transform_19, window_bounds = array<i64: 2, 128>}]} {
    %c0 = arith.constant 0 : index
    %c0_0 = arith.constant 0 : index
    %0 = vector.load %arg1[%c0, %c0_0] : memref<16x1xi32, #tpu.memory_space<vmem>>, vector<16x1xi32>
    %1 = tpu.iota {dimensions = array<i32: 1>} : vector<16x256xi32>
    %2 = vector.broadcast %0 : vector<16x1xi32> to vector<16x256xi32>
    %3 = arith.cmpi eq, %1, %2 : vector<16x256xi32>
    %4 = arith.extui %3 : vector<16x256xi1> to vector<16x256xi32>
    %5 = arith.sitofp %4 : vector<16x256xi32> to vector<16x256xf32>
    %c0_1 = arith.constant 0 : index
    %c0_2 = arith.constant 0 : index
    %6 = vector.load %arg3[%c0_1, %c0_2] : memref<256x64xf32, #tpu.memory_space<vmem>>, vector<256x64xf32>
    %cst = arith.constant dense<0.000000e+00> : vector<16x64xf32>
    %7 = tpu.matmul %5, %6, %cst {dimension_numbers = #tpu.dot_dimension_numbers<[1], [0], [0], [1], [0, 0, 1, 1], [], []>} : vector<16x256xf32>, vector<256x64xf32>, vector<16x64xf32> -> vector<16x64xf32>
    %8 = tpu.iota {dimensions = array<i32: 0>} : vector<16x1xi32>
    %c8_i32 = arith.constant 8 : i32
    %c0_i32 = arith.constant 0 : i32
    %9 = arith.cmpi eq, %c8_i32, %c0_i32 : i32
    %c1_i32 = arith.constant 1 : i32
    %10 = arith.select %9, %c1_i32, %c8_i32 : i32
    %11 = vector.broadcast %10 : i32 to vector<16x1xi32>
    %12 = arith.remsi %8, %11 : vector<16x1xi32>
    %c0_i32_3 = arith.constant 0 : i32
    %13 = vector.broadcast %c0_i32_3 : i32 to vector<16x1xi32>
    %14 = arith.cmpi ne, %12, %13 : vector<16x1xi32>
    %c0_i32_4 = arith.constant 0 : i32
    %15 = vector.broadcast %c0_i32_4 : i32 to vector<16x1xi32>
    %16 = arith.cmpi slt, %12, %15 : vector<16x1xi32>
    %c0_i32_5 = arith.constant 0 : i32
    %17 = arith.cmpi slt, %10, %c0_i32_5 : i32
    %18 = vector.broadcast %17 : i1 to vector<16x1xi1>
    %19 = vector.broadcast %18 : vector<16x1xi1> to vector<16x1xi1>
    %20 = arith.xori %16, %19 : vector<16x1xi1>
    %21 = arith.andi %20, %14 : vector<16x1xi1>
    %22 = vector.broadcast %10 : i32 to vector<16x1xi32>
    %23 = arith.addi %12, %22 : vector<16x1xi32>
    %24 = arith.select %21, %23, %12 : vector<16x1xi1>, vector<16x1xi32>
    %c0_6 = arith.constant 0 : index
    %c0_7 = arith.constant 0 : index
    %25 = vector.load %arg4[%c0_6, %c0_7] : memref<64x384xf32, #tpu.memory_space<vmem>>, vector<64x384xf32>
    %cst_8 = arith.constant dense<0.000000e+00> : vector<16x384xf32>
    %26 = tpu.matmul %7, %25, %cst_8 {dimension_numbers = #tpu.dot_dimension_numbers<[1], [0], [0], [1], [0, 0, 1, 1], [], []>} : vector<16x64xf32>, vector<64x384xf32>, vector<16x384xf32> -> vector<16x384xf32>
    %27 = vector.extract_strided_slice %26 {offsets = [0, 256], sizes = [16, 64], strides = [1, 1]} : vector<16x384xf32> to vector<16x64xf32>
    %28 = vector.extract_strided_slice %26 {offsets = [0, 0], sizes = [16, 64], strides = [1, 1]} : vector<16x384xf32> to vector<16x64xf32>
    %c2_i32 = arith.constant 2 : i32
    %29 = tpu.dynamic_rotate %28 by %c2_i32 dim 0 : vector<16x64xf32>, i32 -> vector<16x64xf32>
    %c2_i32_9 = arith.constant 2 : i32
    %30 = vector.broadcast %c2_i32_9 : i32 to vector<16x1xi32>
    %31 = arith.cmpi sge, %24, %30 : vector<16x1xi32>
    %cst_10 = arith.constant 0.000000e+00 : f32
    %32 = vector.shape_cast %31 : vector<16x1xi1> to vector<16x1xi1>
    %33 = vector.broadcast %32 : vector<16x1xi1> to vector<16x64xi1>
    %34 = vector.broadcast %cst_10 : f32 to vector<16x64xf32>
    %35 = arith.select %33, %29, %34 : vector<16x64xi1>, vector<16x64xf32>
    %36 = arith.addf %27, %35 : vector<16x64xf32>
    %37 = vector.extract_strided_slice %26 {offsets = [0, 128], sizes = [16, 64], strides = [1, 1]} : vector<16x384xf32> to vector<16x64xf32>
    %c1_i32_11 = arith.constant 1 : i32
    %38 = tpu.dynamic_rotate %37 by %c1_i32_11 dim 0 : vector<16x64xf32>, i32 -> vector<16x64xf32>
    %c1_i32_12 = arith.constant 1 : i32
    %39 = vector.broadcast %c1_i32_12 : i32 to vector<16x1xi32>
    %40 = arith.cmpi sge, %24, %39 : vector<16x1xi32>
    %cst_13 = arith.constant 0.000000e+00 : f32
    %41 = vector.shape_cast %40 : vector<16x1xi1> to vector<16x1xi1>
    %42 = vector.broadcast %41 : vector<16x1xi1> to vector<16x64xi1>
    %43 = vector.broadcast %cst_13 : f32 to vector<16x64xf32>
    %44 = arith.select %42, %38, %43 : vector<16x64xi1>, vector<16x64xf32>
    %45 = arith.addf %36, %44 : vector<16x64xf32>
    %c0_14 = arith.constant 0 : index
    %c0_15 = arith.constant 0 : index
    %46 = vector.load %arg5[%c0_14, %c0_15] : memref<1x64xf32, #tpu.memory_space<vmem>>, vector<1x64xf32>
    %47 = vector.broadcast %46 : vector<1x64xf32> to vector<16x64xf32>
    %48 = arith.addf %45, %47 : vector<16x64xf32>
    %cst_16 = arith.constant dense<0.000000e+00> : vector<16xf32>
    %49 = vector.multi_reduction <add>, %48, %cst_16 [1] : vector<16x64xf32> to vector<16xf32>
    %50 = vector.shape_cast %49 : vector<16xf32> to vector<16x1xf32>
    %cst_17 = arith.constant 6.400000e+01 : f32
    %51 = vector.broadcast %cst_17 : f32 to vector<16x1xf32>
    %52 = arith.divf %50, %51 : vector<16x1xf32>
    %53 = arith.mulf %48, %48 : vector<16x64xf32>
    %cst_18 = arith.constant dense<0.000000e+00> : vector<16xf32>
    %54 = vector.multi_reduction <add>, %53, %cst_18 [1] : vector<16x64xf32> to vector<16xf32>
    %55 = vector.shape_cast %54 : vector<16xf32> to vector<16x1xf32>
    %cst_19 = arith.constant 6.400000e+01 : f32
    %56 = vector.broadcast %cst_19 : f32 to vector<16x1xf32>
    %57 = arith.divf %55, %56 : vector<16x1xf32>
    %58 = arith.mulf %52, %52 : vector<16x1xf32>
    %59 = arith.subf %57, %58 : vector<16x1xf32>
    %cst_20 = arith.constant 0.000000e+00 : f32
    %60 = vector.broadcast %cst_20 : f32 to vector<16x1xf32>
    %61 = arith.maximumf %59, %60 : vector<16x1xf32>
    %62 = vector.broadcast %52 : vector<16x1xf32> to vector<16x64xf32>
    %63 = arith.subf %48, %62 : vector<16x64xf32>
    %cst_21 = arith.constant 9.99999974E-6 : f32
    %64 = vector.broadcast %cst_21 : f32 to vector<16x1xf32>
    %65 = arith.addf %61, %64 : vector<16x1xf32>
    %66 = math.rsqrt %65 : vector<16x1xf32>
    %67 = vector.broadcast %66 : vector<16x1xf32> to vector<16x64xf32>
    %68 = arith.mulf %63, %67 : vector<16x64xf32>
    %c0_22 = arith.constant 0 : index
    %c0_23 = arith.constant 0 : index
    %69 = vector.load %arg6[%c0_22, %c0_23] : memref<1x64xf32, #tpu.memory_space<vmem>>, vector<1x64xf32>
    %70 = vector.broadcast %69 : vector<1x64xf32> to vector<16x64xf32>
    %71 = arith.mulf %68, %70 : vector<16x64xf32>
    %c0_24 = arith.constant 0 : index
    %c0_25 = arith.constant 0 : index
    %72 = vector.load %arg7[%c0_24, %c0_25] : memref<1x64xf32, #tpu.memory_space<vmem>>, vector<1x64xf32>
    %73 = vector.broadcast %72 : vector<1x64xf32> to vector<16x64xf32>
    %74 = arith.addf %71, %73 : vector<16x64xf32>
    %cst_26 = arith.constant 0.000000e+00 : f32
    %75 = vector.broadcast %cst_26 : f32 to vector<16x64xf32>
    %76 = arith.maximumf %74, %75 : vector<16x64xf32>
    %77 = arith.addf %7, %76 : vector<16x64xf32>
    %c0_27 = arith.constant 0 : index
    %c0_28 = arith.constant 0 : index
    %78 = vector.load %arg8[%c0_27, %c0_28] : memref<64x384xf32, #tpu.memory_space<vmem>>, vector<64x384xf32>
    %cst_29 = arith.constant dense<0.000000e+00> : vector<16x384xf32>
    %79 = tpu.matmul %77, %78, %cst_29 {dimension_numbers = #tpu.dot_dimension_numbers<[1], [0], [0], [1], [0, 0, 1, 1], [], []>} : vector<16x64xf32>, vector<64x384xf32>, vector<16x384xf32> -> vector<16x384xf32>
    %80 = vector.extract_strided_slice %79 {offsets = [0, 256], sizes = [16, 64], strides = [1, 1]} : vector<16x384xf32> to vector<16x64xf32>
    %81 = vector.extract_strided_slice %79 {offsets = [0, 0], sizes = [16, 64], strides = [1, 1]} : vector<16x384xf32> to vector<16x64xf32>
    %c4_i32 = arith.constant 4 : i32
    %82 = tpu.dynamic_rotate %81 by %c4_i32 dim 0 : vector<16x64xf32>, i32 -> vector<16x64xf32>
    %c4_i32_30 = arith.constant 4 : i32
    %83 = vector.broadcast %c4_i32_30 : i32 to vector<16x1xi32>
    %84 = arith.cmpi sge, %24, %83 : vector<16x1xi32>
    %cst_31 = arith.constant 0.000000e+00 : f32
    %85 = vector.shape_cast %84 : vector<16x1xi1> to vector<16x1xi1>
    %86 = vector.broadcast %85 : vector<16x1xi1> to vector<16x64xi1>
    %87 = vector.broadcast %cst_31 : f32 to vector<16x64xf32>
    %88 = arith.select %86, %82, %87 : vector<16x64xi1>, vector<16x64xf32>
    %89 = arith.addf %80, %88 : vector<16x64xf32>
    %90 = vector.extract_strided_slice %79 {offsets = [0, 128], sizes = [16, 64], strides = [1, 1]} : vector<16x384xf32> to vector<16x64xf32>
    %c2_i32_32 = arith.constant 2 : i32
    %91 = tpu.dynamic_rotate %90 by %c2_i32_32 dim 0 : vector<16x64xf32>, i32 -> vector<16x64xf32>
    %c2_i32_33 = arith.constant 2 : i32
    %92 = vector.broadcast %c2_i32_33 : i32 to vector<16x1xi32>
    %93 = arith.cmpi sge, %24, %92 : vector<16x1xi32>
    %cst_34 = arith.constant 0.000000e+00 : f32
    %94 = vector.shape_cast %93 : vector<16x1xi1> to vector<16x1xi1>
    %95 = vector.broadcast %94 : vector<16x1xi1> to vector<16x64xi1>
    %96 = vector.broadcast %cst_34 : f32 to vector<16x64xf32>
    %97 = arith.select %95, %91, %96 : vector<16x64xi1>, vector<16x64xf32>
    %98 = arith.addf %89, %97 : vector<16x64xf32>
    %c0_35 = arith.constant 0 : index
    %c0_36 = arith.constant 0 : index
    %99 = vector.load %arg9[%c0_35, %c0_36] : memref<1x64xf32, #tpu.memory_space<vmem>>, vector<1x64xf32>
    %100 = vector.broadcast %99 : vector<1x64xf32> to vector<16x64xf32>
    %101 = arith.addf %98, %100 : vector<16x64xf32>
    %cst_37 = arith.constant dense<0.000000e+00> : vector<16xf32>
    %102 = vector.multi_reduction <add>, %101, %cst_37 [1] : vector<16x64xf32> to vector<16xf32>
    %103 = vector.shape_cast %102 : vector<16xf32> to vector<16x1xf32>
    %cst_38 = arith.constant 6.400000e+01 : f32
    %104 = vector.broadcast %cst_38 : f32 to vector<16x1xf32>
    %105 = arith.divf %103, %104 : vector<16x1xf32>
    %106 = arith.mulf %101, %101 : vector<16x64xf32>
    %cst_39 = arith.constant dense<0.000000e+00> : vector<16xf32>
    %107 = vector.multi_reduction <add>, %106, %cst_39 [1] : vector<16x64xf32> to vector<16xf32>
    %108 = vector.shape_cast %107 : vector<16xf32> to vector<16x1xf32>
    %cst_40 = arith.constant 6.400000e+01 : f32
    %109 = vector.broadcast %cst_40 : f32 to vector<16x1xf32>
    %110 = arith.divf %108, %109 : vector<16x1xf32>
    %111 = arith.mulf %105, %105 : vector<16x1xf32>
    %112 = arith.subf %110, %111 : vector<16x1xf32>
    %cst_41 = arith.constant 0.000000e+00 : f32
    %113 = vector.broadcast %cst_41 : f32 to vector<16x1xf32>
    %114 = arith.maximumf %112, %113 : vector<16x1xf32>
    %115 = vector.broadcast %105 : vector<16x1xf32> to vector<16x64xf32>
    %116 = arith.subf %101, %115 : vector<16x64xf32>
    %cst_42 = arith.constant 9.99999974E-6 : f32
    %117 = vector.broadcast %cst_42 : f32 to vector<16x1xf32>
    %118 = arith.addf %114, %117 : vector<16x1xf32>
    %119 = math.rsqrt %118 : vector<16x1xf32>
    %120 = vector.broadcast %119 : vector<16x1xf32> to vector<16x64xf32>
    %121 = arith.mulf %116, %120 : vector<16x64xf32>
    %c0_43 = arith.constant 0 : index
    %c0_44 = arith.constant 0 : index
    %122 = vector.load %arg10[%c0_43, %c0_44] : memref<1x64xf32, #tpu.memory_space<vmem>>, vector<1x64xf32>
    %123 = vector.broadcast %122 : vector<1x64xf32> to vector<16x64xf32>
    %124 = arith.mulf %121, %123 : vector<16x64xf32>
    %c0_45 = arith.constant 0 : index
    %c0_46 = arith.constant 0 : index
    %125 = vector.load %arg11[%c0_45, %c0_46] : memref<1x64xf32, #tpu.memory_space<vmem>>, vector<1x64xf32>
    %126 = vector.broadcast %125 : vector<1x64xf32> to vector<16x64xf32>
    %127 = arith.addf %124, %126 : vector<16x64xf32>
    %cst_47 = arith.constant 0.000000e+00 : f32
    %128 = vector.broadcast %cst_47 : f32 to vector<16x64xf32>
    %129 = arith.maximumf %127, %128 : vector<16x64xf32>
    %130 = arith.addf %77, %129 : vector<16x64xf32>
    %c0_48 = arith.constant 0 : index
    %c0_49 = arith.constant 0 : index
    %131 = vector.load %arg2[%c0_48, %c0_49] : memref<2x128xf32, #tpu.memory_space<vmem>>, vector<2x128xf32>
    %c0_50 = arith.constant 0 : index
    %c0_51 = arith.constant 0 : index
    %132 = vector.load %arg17[%c0_50, %c0_51] : memref<128x256xf32, #tpu.memory_space<vmem>>, vector<128x256xf32>
    %cst_52 = arith.constant dense<0.000000e+00> : vector<2x256xf32>
    %133 = tpu.matmul %131, %132, %cst_52 {dimension_numbers = #tpu.dot_dimension_numbers<[1], [0], [0], [1], [0, 0, 1, 1], [], []>} : vector<2x128xf32>, vector<128x256xf32>, vector<2x256xf32> -> vector<2x256xf32>
    %c0_53 = arith.constant 0 : index
    %c0_54 = arith.constant 0 : index
    %134 = vector.load %arg18[%c0_53, %c0_54] : memref<1x256xf32, #tpu.memory_space<vmem>>, vector<1x256xf32>
    %135 = vector.broadcast %134 : vector<1x256xf32> to vector<2x256xf32>
    %136 = arith.addf %133, %135 : vector<2x256xf32>
    %c0_55 = arith.constant 0 : index
    %c0_56 = arith.constant 0 : index
    %137 = vector.load %arg16[%c0_55, %c0_56] : memref<64x256xf32, #tpu.memory_space<vmem>>, vector<64x256xf32>
    %cst_57 = arith.constant dense<0.000000e+00> : vector<16x256xf32>
    %138 = tpu.matmul %130, %137, %cst_57 {dimension_numbers = #tpu.dot_dimension_numbers<[1], [0], [0], [1], [0, 0, 1, 1], [], []>} : vector<16x64xf32>, vector<64x256xf32>, vector<16x256xf32> -> vector<16x256xf32>
    %139 = vector.shape_cast %138 : vector<16x256xf32> to vector<2x8x256xf32>
    %140 = vector.shape_cast %136 : vector<2x256xf32> to vector<2x1x256xf32>
    %141 = vector.broadcast %140 : vector<2x1x256xf32> to vector<2x8x256xf32>
    %142 = arith.addf %139, %141 : vector<2x8x256xf32>
    %cst_58 = arith.constant dense<0xFF800000> : vector<2x8xf32>
    %143 = vector.multi_reduction <maximumf>, %142, %cst_58 [2] : vector<2x8x256xf32> to vector<2x8xf32>
    %144 = vector.shape_cast %143 : vector<2x8xf32> to vector<2x8x1xf32>
    %145 = vector.broadcast %144 : vector<2x8x1xf32> to vector<2x8x256xf32>
    %146 = arith.subf %142, %145 : vector<2x8x256xf32>
    %147 = math.exp %146 : vector<2x8x256xf32>
    %cst_59 = arith.constant dense<0.000000e+00> : vector<2x8xf32>
    %148 = vector.multi_reduction <add>, %147, %cst_59 [2] : vector<2x8x256xf32> to vector<2x8xf32>
    %149 = vector.shape_cast %148 : vector<2x8xf32> to vector<2x8x1xf32>
    %150 = math.log %149 : vector<2x8x1xf32>
    %151 = vector.broadcast %150 : vector<2x8x1xf32> to vector<2x8x256xf32>
    %152 = arith.subf %146, %151 : vector<2x8x256xf32>
    %c0_60 = arith.constant 0 : index
    %c0_61 = arith.constant 0 : index
    %c0_62 = arith.constant 0 : index
    %153 = vector.load %arg19[%c0_60, %c0_61, %c0_62] : memref<2x8x256xf32, #tpu.memory_space<vmem>>, vector<2x8x256xf32>
    tpu.vector_store %arg19[%c0_60, %c0_61, %c0_62], %152 {strides = array<i32>} : memref<2x8x256xf32, #tpu.memory_space<vmem>>, vector<2x8x256xf32>,
    %154 = vector.shape_cast %130 : vector<16x64xf32> to vector<2x8x64xf32>
    %155 = vector.extract_strided_slice %154 {offsets = [0, 7, 0], sizes = [2, 1, 64], strides = [1, 1, 1]} : vector<2x8x64xf32> to vector<2x1x64xf32>
    %156 = vector.shape_cast %155 : vector<2x1x64xf32> to vector<2x64xf32>
    %c0_63 = arith.constant 0 : index
    %c0_64 = arith.constant 0 : index
    %157 = vector.load %arg14[%c0_63, %c0_64] : memref<128x64xf32, #tpu.memory_space<vmem>>, vector<128x64xf32>
    %cst_65 = arith.constant dense<0.000000e+00> : vector<2x64xf32>
    %158 = tpu.matmul %131, %157, %cst_65 {dimension_numbers = #tpu.dot_dimension_numbers<[1], [0], [0], [1], [0, 0, 1, 1], [], []>} : vector<2x128xf32>, vector<128x64xf32>, vector<2x64xf32> -> vector<2x64xf32>
    %c0_66 = arith.constant 0 : index
    %c0_67 = arith.constant 0 : index
    %159 = vector.load %arg15[%c0_66, %c0_67] : memref<1x64xf32, #tpu.memory_space<vmem>>, vector<1x64xf32>
    %160 = vector.broadcast %159 : vector<1x64xf32> to vector<2x64xf32>
    %161 = arith.addf %158, %160 : vector<2x64xf32>
    %c0_68 = arith.constant 0 : index
    %c0_69 = arith.constant 0 : index
    %162 = vector.load %arg12[%c0_68, %c0_69] : memref<64x64xf32, #tpu.memory_space<vmem>>, vector<64x64xf32>
    %cst_70 = arith.constant dense<0.000000e+00> : vector<2x64xf32>
    %163 = tpu.matmul %156, %162, %cst_70 {dimension_numbers = #tpu.dot_dimension_numbers<[1], [0], [0], [1], [0, 0, 1, 1], [], []>} : vector<2x64xf32>, vector<64x64xf32>, vector<2x64xf32> -> vector<2x64xf32>
    %c0_71 = arith.constant 0 : index
    %c0_72 = arith.constant 0 : index
    %164 = vector.load %arg13[%c0_71, %c0_72] : memref<1x64xf32, #tpu.memory_space<vmem>>, vector<1x64xf32>
    %165 = vector.broadcast %164 : vector<1x64xf32> to vector<2x64xf32>
    %166 = arith.addf %163, %165 : vector<2x64xf32>
    %167 = arith.addf %166, %161 : vector<2x64xf32>
    %cst_73 = arith.constant 0.000000e+00 : f32
    %168 = vector.broadcast %cst_73 : f32 to vector<2x64xf32>
    %169 = tpu.concatenate %167, %168 in 1 : vector<2x64xf32>, vector<2x64xf32> -> vector<2x128xf32>
    %c0_74 = arith.constant 0 : index
    %c0_75 = arith.constant 0 : index
    %170 = vector.load %arg20[%c0_74, %c0_75] : memref<2x128xf32, #tpu.memory_space<vmem>>, vector<2x128xf32>
    tpu.vector_store %arg20[%c0_74, %c0_75], %169 {strides = array<i32>} : memref<2x128xf32, #tpu.memory_space<vmem>>, vector<2x128xf32>,
    return
  }
  func.func @transform_0(%arg0: i32) -> (i32, i32) {
    %c0_i32 = arith.constant 0 : i32
    %c0_i32_0 = arith.constant 0 : i32
    return %arg0, %c0_i32 : i32, i32
  }
  func.func @transform_1(%arg0: i32) -> (i32, i32) {
    %c0_i32 = arith.constant 0 : i32
    %c0_i32_0 = arith.constant 0 : i32
    return %arg0, %c0_i32 : i32, i32
  }
  func.func @transform_2(%arg0: i32) -> (i32, i32) {
    %c0_i32 = arith.constant 0 : i32
    %c0_i32_0 = arith.constant 0 : i32
    %c0_i32_1 = arith.constant 0 : i32
    return %c0_i32, %c0_i32_0 : i32, i32
  }
  func.func @transform_3(%arg0: i32) -> (i32, i32) {
    %c0_i32 = arith.constant 0 : i32
    %c0_i32_0 = arith.constant 0 : i32
    %c0_i32_1 = arith.constant 0 : i32
    return %c0_i32, %c0_i32_0 : i32, i32
  }
  func.func @transform_4(%arg0: i32) -> (i32, i32) {
    %c0_i32 = arith.constant 0 : i32
    %c0_i32_0 = arith.constant 0 : i32
    %c0_i32_1 = arith.constant 0 : i32
    return %c0_i32, %c0_i32_0 : i32, i32
  }
  func.func @transform_5(%arg0: i32) -> (i32, i32) {
    %c0_i32 = arith.constant 0 : i32
    %c0_i32_0 = arith.constant 0 : i32
    %c0_i32_1 = arith.constant 0 : i32
    return %c0_i32, %c0_i32_0 : i32, i32
  }
  func.func @transform_6(%arg0: i32) -> (i32, i32) {
    %c0_i32 = arith.constant 0 : i32
    %c0_i32_0 = arith.constant 0 : i32
    %c0_i32_1 = arith.constant 0 : i32
    return %c0_i32, %c0_i32_0 : i32, i32
  }
  func.func @transform_7(%arg0: i32) -> (i32, i32) {
    %c0_i32 = arith.constant 0 : i32
    %c0_i32_0 = arith.constant 0 : i32
    %c0_i32_1 = arith.constant 0 : i32
    return %c0_i32, %c0_i32_0 : i32, i32
  }
  func.func @transform_8(%arg0: i32) -> (i32, i32) {
    %c0_i32 = arith.constant 0 : i32
    %c0_i32_0 = arith.constant 0 : i32
    %c0_i32_1 = arith.constant 0 : i32
    return %c0_i32, %c0_i32_0 : i32, i32
  }
  func.func @transform_9(%arg0: i32) -> (i32, i32) {
    %c0_i32 = arith.constant 0 : i32
    %c0_i32_0 = arith.constant 0 : i32
    %c0_i32_1 = arith.constant 0 : i32
    return %c0_i32, %c0_i32_0 : i32, i32
  }
  func.func @transform_10(%arg0: i32) -> (i32, i32) {
    %c0_i32 = arith.constant 0 : i32
    %c0_i32_0 = arith.constant 0 : i32
    %c0_i32_1 = arith.constant 0 : i32
    return %c0_i32, %c0_i32_0 : i32, i32
  }
  func.func @transform_11(%arg0: i32) -> (i32, i32) {
    %c0_i32 = arith.constant 0 : i32
    %c0_i32_0 = arith.constant 0 : i32
    %c0_i32_1 = arith.constant 0 : i32
    return %c0_i32, %c0_i32_0 : i32, i32
  }
  func.func @transform_12(%arg0: i32) -> (i32, i32) {
    %c0_i32 = arith.constant 0 : i32
    %c0_i32_0 = arith.constant 0 : i32
    %c0_i32_1 = arith.constant 0 : i32
    return %c0_i32, %c0_i32_0 : i32, i32
  }
  func.func @transform_13(%arg0: i32) -> (i32, i32) {
    %c0_i32 = arith.constant 0 : i32
    %c0_i32_0 = arith.constant 0 : i32
    %c0_i32_1 = arith.constant 0 : i32
    return %c0_i32, %c0_i32_0 : i32, i32
  }
  func.func @transform_14(%arg0: i32) -> (i32, i32) {
    %c0_i32 = arith.constant 0 : i32
    %c0_i32_0 = arith.constant 0 : i32
    %c0_i32_1 = arith.constant 0 : i32
    return %c0_i32, %c0_i32_0 : i32, i32
  }
  func.func @transform_15(%arg0: i32) -> (i32, i32) {
    %c0_i32 = arith.constant 0 : i32
    %c0_i32_0 = arith.constant 0 : i32
    %c0_i32_1 = arith.constant 0 : i32
    return %c0_i32, %c0_i32_0 : i32, i32
  }
  func.func @transform_16(%arg0: i32) -> (i32, i32) {
    %c0_i32 = arith.constant 0 : i32
    %c0_i32_0 = arith.constant 0 : i32
    %c0_i32_1 = arith.constant 0 : i32
    return %c0_i32, %c0_i32_0 : i32, i32
  }
  func.func @transform_17(%arg0: i32) -> (i32, i32) {
    %c0_i32 = arith.constant 0 : i32
    %c0_i32_0 = arith.constant 0 : i32
    %c0_i32_1 = arith.constant 0 : i32
    return %c0_i32, %c0_i32_0 : i32, i32
  }
  func.func @transform_18(%arg0: i32) -> (i32, i32, i32) {
    %c0_i32 = arith.constant 0 : i32
    %c0_i32_0 = arith.constant 0 : i32
    %c0_i32_1 = arith.constant 0 : i32
    return %arg0, %c0_i32, %c0_i32_0 : i32, i32, i32
  }
  func.func @transform_19(%arg0: i32) -> (i32, i32) {
    %c0_i32 = arith.constant 0 : i32
    %c0_i32_0 = arith.constant 0 : i32
    return %arg0, %c0_i32 : i32, i32
  }
}

</mosaic_0001>

<bundles_post_ra>
// kernel: wave_feedback_forward.1
= control target key start
LH: loop header
LB: loop body
LE: loop exit
PB: predicated region body
PF: predicated region fallthrough
CT: control target
= control target key end

     0   :  { %s2507_s0 = inlined_call_operand.vmem [shape: s32[16,1], index: 0, kind: input, shape index: {}]   ;;  %s2508_s1 = inlined_call_operand.vmem [shape: f32[2,128], index: 1, kind: input, shape index: {}]   ;;  %s2509_s2 = inlined_call_operand.vmem [shape: f32[256,64], index: 2, kind: input, shape index: {}]   ;;  %s2510_s3 = inlined_call_operand.vmem [shape: f32[64,384], index: 3, kind: input, shape index: {}]   ;;  %s2511_s4 = inlined_call_operand.vmem [shape: f32[1,64], index: 4, kind: input, shape index: {}]   ;;  %s2512_s5 = inlined_call_operand.vmem [shape: f32[1,64], index: 5, kind: input, shape index: {}]   ;;  %s2513_s6 = inlined_call_operand.vmem [shape: f32[1,64], index: 6, kind: input, shape index: {}]   ;;  %s2514_s7 = inlined_call_operand.vmem [shape: f32[64,384], index: 7, kind: input, shape index: {}]   ;;  %s2515_s8 = inlined_call_operand.vmem [shape: f32[1,64], index: 8, kind: input, shape index: {}]   ;;  %s2516_s9 = inlined_call_operand.vmem [shape: f32[1,64], index: 9, kind: input, shape index: {}]   ;;  %s2517_s10 = inlined_call_operand.vmem [shape: f32[1,64], index: 10, kind: input, shape index: {}]   ;;  %s2518_s11 = inlined_call_operand.vmem [shape: f32[64,64], index: 11, kind: input, shape index: {}]   ;;  %s2519_s12 = inlined_call_operand.vmem [shape: f32[1,64], index: 12, kind: input, shape index: {}]   ;;  %s2520_s13 = inlined_call_operand.vmem [shape: f32[128,64], index: 13, kind: input, shape index: {}]   ;;  %s2521_s14 = inlined_call_operand.vmem [shape: f32[1,64], index: 14, kind: input, shape index: {}]   ;;  %s2522_s15 = inlined_call_operand.vmem [shape: f32[64,256], index: 15, kind: input, shape index: {}]   ;;  %s2523_s16 = inlined_call_operand.vmem [shape: f32[128,256], index: 16, kind: input, shape index: {}]   ;;  %s2524_s17 = inlined_call_operand.vmem [shape: f32[1,256], index: 17, kind: input, shape index: {}]   ;;  %s2525_s18 = inlined_call_operand.hbm [shape: f32[2,8,256], index: 18, kind: output, shape index: {0}]   ;;  %s2526_s19 = inlined_call_operand.hbm [shape: f32[2,128], index: 19, kind: output, shape index: {1}]  }
   0x1   :  { %2530 = sst [smem:[#allocation8_spill]] %s2507_s0 }
   0x2   :  { %2531 = sst [smem:[#allocation9_spill]] %s2508_s1 }
   0x3   :  { %2532 = sst [smem:[#allocation10_spill]] %s2509_s2 }
   0x4   :  { %2533 = sst [smem:[#allocation11_spill]] %s2510_s3 }
   0x5   :  { %25 = vsyncpa [#allocation3], 0  ;;  %s2534_s20 = sld [smem:[#allocation8_spill]]  ;;  %s2535_s22 = sld [smem:[#allocation10_spill]]  ;;  %v1748_v2 = vmov 0  }
   0x6   :  { %1679 = vset.pattern.permute.xlu0 %v1748_v2  ;;  %s2536_s30 = sld [smem:[#allocation11_spill]] }
   0xb   :  { %v63_v0 = vld [vmem:[%s2534_s20] sm:$0xff]  ;;  %v64_v3 = vld [vmem:[%s2534_s20 + $0x8] sm:$0xff]  ;;  %v104_v9 = vld [vmem:[%s2535_s22 + $0x90] sm:$0xff] }
   0xc   :  { %v102_v1 = vld [vmem:[%s2535_s22 + $0x80] sm:$0xff]  ;;  %v103_v4 = vld [vmem:[%s2535_s22 + $0x88] sm:$0xff]  ;;  %69 = vperm.xlu0 %1679, %v63_v0   ;;  %v105_v10 = vld [vmem:[%s2535_s22 + $0x98] sm:$0xff] }
   0xd   :  { %v86_v5 = vld [vmem:[%s2535_s22] sm:$0xff]  ;;  %v87_v6 = vld [vmem:[%s2535_s22 + $0x8] sm:$0xff]  ;;  %v1485_v7 = vpack.c.bf16 %v103_v4, %v102_v1  ;;  %v88_v11 = vld [vmem:[%s2535_s22 + $0x10] sm:$0xff]  ;;  %v1489_v12 = vpack.c.bf16 %v105_v10, %v104_v9 }
   0xe   :  { %v1487_v8 = vpack.c.bf16 %v87_v6, %v86_v5  ;;  %v89_v13 = vld [vmem:[%s2535_s22 + $0x18] sm:$0xff]  ;;  %v106_v14 = vld [vmem:[%s2535_s22 + $0xa0] sm:$0xff]  ;;  %v107_v15 = vld [vmem:[%s2535_s22 + $0xa8] sm:$0xff] }
   0xf   :  { %1486 = vmatprep.subr.bf16.mxu0 %v1485_v7  ;;  %v1491_v16 = vpack.c.bf16 %v89_v13, %v88_v11  ;;  %v1493_v17 = vpack.c.bf16 %v107_v15, %v106_v14  ;;  %v90_v18 = vld [vmem:[%s2535_s22 + $0x20] sm:$0xff]  ;;  %v91_v19 = vld [vmem:[%s2535_s22 + $0x28] sm:$0xff]  ;;  %v108_v20 = vld [vmem:[%s2535_s22 + $0xb0] sm:$0xff] }
  0x10   :  { %1488 = vmatpush3.bf16.msra.mxu0 %v1487_v8  ;;  %72 = vperm.xlu0 %1679, %v64_v3   ;;  %v109_v21 = vld [vmem:[%s2535_s22 + $0xb8] sm:$0xff]  ;;  %v1495_v22 = vpack.c.bf16 %v91_v19, %v90_v18  ;;  %v92_v24 = vld [vmem:[%s2535_s22 + $0x30] sm:$0xff]  ;;  %v110_v26 = vld [vmem:[%s2535_s22 + $0xc0] sm:$0xff] }
  0x11   :  { %1490 = vmatprep.subr.bf16.mxu0 %v1489_v12  ;;  %v1497_v23 = vpack.c.bf16 %v109_v21, %v108_v20  ;;  %v93_v25 = vld [vmem:[%s2535_s22 + $0x38] sm:$0xff]  ;;  %v111_v27 = vld [vmem:[%s2535_s22 + $0xc8] sm:$0xff]  ;;  %v222_v29 = vld [vmem:[%s2536_s30 + $0x10] sm:$0xff] }
  0x12   :  { %v1499_v28 = vpack.c.bf16 %v93_v25, %v92_v24  ;;  %v225_v30 = vld [vmem:[%s2536_s30 + $0x28] sm:$0xff]  ;;  %v1501_v31 = vpack.c.bf16 %v111_v27, %v110_v26  ;;  %v94_v32 = vld [vmem:[%s2535_s22 + $0x40] sm:$0xff]  ;;  %v112_v34 = vld [vmem:[%s2535_s22 + $0xd0] sm:$0xff] }
  0x13   :  { %v95_v33 = vld [vmem:[%s2535_s22 + $0x48] sm:$0xff]  ;;  %v1533_v35 = vpack.c.bf16 %v225_v30, %v222_v29  ;;  %v113_v36 = vld [vmem:[%s2535_s22 + $0xd8] sm:$0xff]  ;;  %v228_v37 = vld [vmem:[%s2536_s30 + $0x40] sm:$0xff] }
  0x14   :  { %1492 = vmatpush3.bf16.msra.mxu0 %v1491_v16  ;;  %v231_v38 = vld [vmem:[%s2536_s30 + $0x58] sm:$0xff] }
  0x15   :  { %1494 = vmatprep.subr.bf16.mxu0 %v1493_v17  ;;  %1534 = vmatprep.subr.bf16.mxu1 %v1533_v35  ;;  %v1537_v39 = vpack.c.bf16 %v231_v38, %v228_v37 }
  0x18   :  { %1496 = vmatpush3.bf16.msra.mxu0 %v1495_v22 }
  0x19   :  { %1498 = vmatprep.subr.bf16.mxu0 %v1497_v23 }
  0x1a   :  { %26 = vsyncpa [#allocation5], 0  ;;  %v1503_v40 = vpack.c.bf16 %v95_v33, %v94_v32  ;;  %1536 = vmatpush3.bf16.msra.mxu1 %v1533_v35  ;;  %v1505_v41 = vpack.c.bf16 %v113_v36, %v112_v34  ;;  %v96_v42 = vld [vmem:[%s2535_s22 + $0x50] sm:$0xff]  ;;  %v97_v43 = vld [vmem:[%s2535_s22 + $0x58] sm:$0xff]  ;;  %v65_v60 = vlaneseq  ;;  %v1749_v8 = vmov 1.0   ;;  %s2537_s28 = sld [smem:[#allocation9_spill]] }
  0x1b   :  { %1538 = vmatprep.subr.bf16.mxu1 %v1537_v39  ;;  %v114_v44 = vld [vmem:[%s2535_s22 + $0xe0] sm:$0xff]  ;;  %v115_v45 = vld [vmem:[%s2535_s22 + $0xe8] sm:$0xff]  ;;  %v1507_v46 = vpack.c.bf16 %v97_v43, %v96_v42  ;;  %v116_v50 = vld [vmem:[%s2535_s22 + $0xf0] sm:$0xff]  ;;  %v1750_v29 = vmov 0.0   ;;  %vm244_vm4 = vcmask 523264   ;;  %vm1752_vm14 = vmmov 0  }
  0x1c   :  { %1500 = vmatpush3.bf16.msra.mxu0 %v1499_v28  ;;  %v1509_v47 = vpack.c.bf16 %v115_v45, %v114_v44  ;;  %v98_v48 = vld [vmem:[%s2535_s22 + $0x60] sm:$0xff]  ;;  %v99_v49 = vld [vmem:[%s2535_s22 + $0x68] sm:$0xff]  ;;  %v117_v51 = vld [vmem:[%s2535_s22 + $0xf8] sm:$0xff]  ;;  %v66_v61 = vand.u32 127, %v65_v60  ;;  %v2049_v36 = vshrl.u32 %v65_v60, 7  ;;  %vm1175_vm15 = vcmask 1041409  }
  0x1d   :  { %1502 = vmatprep.subr.bf16.mxu0 %v1501_v31  ;;  %v1511_v52 = vpack.c.bf16 %v99_v49, %v98_v48  ;;  %v1513_v53 = vpack.c.bf16 %v117_v51, %v116_v50  ;;  %v100_v54 = vld [vmem:[%s2535_s22 + $0x70] sm:$0xff]  ;;  %v101_v55 = vld [vmem:[%s2535_s22 + $0x78] sm:$0xff]  ;;  %v221_v56 = vld [vmem:[%s2536_s30 + $0x8] sm:$0xff] }
  0x1e   :  { %1540 = vmatpush3.bf16.msra.mxu1 %v1537_v39  ;;  %v224_v57 = vld [vmem:[%s2536_s30 + $0x20] sm:$0xff]  ;;  %v1515_v58 = vpack.c.bf16 %v101_v55, %v100_v54  ;;  %v67_v62 = vadd.s32 128, %v66_v61  ;;  %v223_v0 = vld [vmem:[%s2536_s30 + $0x18] sm:$0xff]  ;;  %v230_v2 = vld [vmem:[%s2536_s30 + $0x50] sm:$0xff]  ;;  %v195_v37 = vadd.s32 8, %v2049_v36  ;;  %vm405_vm5 = vcmp.lt.s32.totalorder %v2049_v36, 2 }
  0x1f   :  { %v1517_v59 = vpack.c.bf16 %v224_v57, %v221_v56  ;;  %v220_v63 = vld [vmem:[%s2536_s30] sm:$0xff]  ;;  %v227_v1 = vld [vmem:[%s2536_s30 + $0x38] sm:$0xff]  ;;  %v226_v6 = vld [vmem:[%s2536_s30 + $0x30] sm:$0xff]  ;;  %vm420_vm7 = vcmp.lt.s32.totalorder %v2049_v36, 1  ;;  %vm681_vm11 = vcmp.lt.s32.totalorder %v2049_v36, 4 }
  0x20   :  { %1504 = vmatpush3.bf16.msra.mxu0 %v1503_v40  ;;  %v1519_v4 = vpack.c.bf16 %v223_v0, %v220_v63  ;;  %v1521_v5 = vpack.c.bf16 %v230_v2, %v227_v1  ;;  %v229_v7 = vld [vmem:[%s2536_s30 + $0x48] sm:$0xff]  ;;  %v236_v10 = vld [vmem:[%s2536_s30 + $0x80] sm:$0xff]  ;;  %v235_v15 = vld [vmem:[%s2536_s30 + $0x78] sm:$0xff]  ;;  %v2052_v39 = vand.u32 7, %v195_v37 }
  0x21   :  { %1506 = vmatprep.subr.bf16.mxu0 %v1505_v41  ;;  %v233_v9 = vld [vmem:[%s2536_s30 + $0x68] sm:$0xff]  ;;  %v1523_v12 = vpack.c.bf16 %v229_v7, %v226_v6  ;;  %v232_v14 = vld [vmem:[%s2536_s30 + $0x60] sm:$0xff]  ;;  %v239_v17 = vld [vmem:[%s2536_s30 + $0x98] sm:$0xff]  ;;  %v2055_v41 = vand.u32 7, %v2049_v36 }
  0x22   :  { %v1525_v13 = vpack.c.bf16 %v236_v10, %v233_v9  ;;  %v1527_v16 = vpack.c.bf16 %v235_v15, %v232_v14  ;;  %v242_v18 = vld [vmem:[%s2536_s30 + $0xb0] sm:$0xff]  ;;  %v237_v21 = vld [vmem:[%s2536_s30 + $0x88] sm:$0xff]  ;;  %v240_v26 = vld [vmem:[%s2536_s30 + $0xa0] sm:$0xff]  ;;  %vm409_vm6 = vcmp.ge.s32.totalorder %v2052_v39, 2  ;;  %vm424_vm9 = vcmp.ge.s32.totalorder %v2052_v39, 1 }
  0x23   :  { %v234_v19 = vld [vmem:[%s2536_s30 + $0x70] sm:$0xff]  ;;  %v1529_v20 = vpack.c.bf16 %v242_v18, %v239_v17  ;;  %v241_v23 = vld [vmem:[%s2536_s30 + $0xa8] sm:$0xff]  ;;  %v243_v27 = vld [vmem:[%s2536_s30 + $0xb8] sm:$0xff]  ;;  %vm408_vm8 = vcmp.ge.s32.totalorder %v2055_v41, 2  ;;  %vm423_vm10 = vcmp.ge.s32.totalorder %v2055_v41, 1  ;;  %vm685_vm12 = vcmp.ge.s32.totalorder %v2052_v39, 4 }
  0x24   :  { %1508 = vmatpush3.bf16.msra.mxu0 %v1507_v46  ;;  %v238_v22 = vld [vmem:[%s2536_s30 + $0x90] sm:$0xff]  ;;  %v1541_v24 = vpack.c.bf16 %v237_v21, %v234_v19  ;;  %v1545_v28 = vpack.c.bf16 %v243_v27, %v240_v26  ;;  %v1294_v60 = vld [vmem:[%s2511_s4] ss:$0 sm:$0xff]  ;;  %v498_v7 = vld [vmem:[%s2514_s7 + $0x8] sm:$0xff]  ;;  %vm684_vm13 = vcmp.ge.s32.totalorder %v2055_v41, 4 }
  0x25   :  { %1510 = vmatprep.subr.bf16.mxu0 %v1509_v47  ;;  %v1531_v25 = vpack.c.bf16 %v241_v23, %v238_v22  ;;  %v497_v10 = vld [vmem:[%s2514_s7] sm:$0xff]  ;;  %v507_v14 = vld [vmem:[%s2514_s7 + $0x50] sm:$0xff]  ;;  %v502_v17 = vld [vmem:[%s2514_s7 + $0x28] sm:$0xff] }
  0x26   :  { %1542 = vmatprep.subr.bf16.mxu1 %v1541_v24  ;;  %v499_v15 = vld [vmem:[%s2514_s7 + $0x10] sm:$0xff]  ;;  %v506_v19 = vld [vmem:[%s2514_s7 + $0x48] sm:$0xff]  ;;  %v513_v23 = vld [vmem:[%s2514_s7 + $0x80] sm:$0xff] }
  0x27   :  { %1544 = vmatpush3.bf16.msra.mxu1 %v1541_v24  ;;  %v503_v18 = vld [vmem:[%s2514_s7 + $0x30] sm:$0xff]  ;;  %v510_v22 = vld [vmem:[%s2514_s7 + $0x68] sm:$0xff]  ;;  %v505_v24 = vld [vmem:[%s2514_s7 + $0x40] sm:$0xff] }
  0x28   :  { %1512 = vmatpush3.bf16.msra.mxu0 %v1511_v52  ;;  %1546 = vmatprep.subr.bf16.mxu1 %v1545_v28  ;;  %v1555_v21 = vpack.c.bf16 %v506_v19, %v503_v18  ;;  %v508_v26 = vld [vmem:[%s2514_s7 + $0x58] sm:$0xff]  ;;  %v509_v27 = vld [vmem:[%s2514_s7 + $0x60] sm:$0xff]  ;;  %v511_v37 = vld [vmem:[%s2514_s7 + $0x70] sm:$0xff] }
  0x29   :  { %1514 = vmatprep.subr.bf16.mxu0 %v1513_v53  ;;  %v768_v19 = vld [vmem:[%s2523_s16 + $0x10] sm:$0xff] }
  0x2b   :  { %1548 = vmatpush3.bf16.msra.mxu1 %v1545_v28  ;;  %v512_v28 = vld [vmem:[%s2514_s7 + $0x78] sm:$0xff] }
  0x2c   :  { %1516 = vmatpush3.bf16.msra.mxu0 %v1515_v58 }
  0x2d   :  { %1518 = vmatprep.subr.bf16.mxu0 %v1517_v59 }
  0x8b   :  { %v70_v3 = vpop.permute.xlu0 %69 }
  0x8c   :  { %vm74_vm0 = vcmp.eq.s32.totalorder %v66_v61, %v70_v3  ;;  %vm75_vm1 = vcmp.eq.s32.totalorder %v67_v62, %v70_v3 }
  0x8d   :  { %1286 = vmatprep.mubr.msk.f32.mxu0 %vm75_vm1, %v1749_v8 }
  0x8e   :  { %1287 = vmatmul.mubr.msk.f32.vlgmr.msra.gmra.mrb[0].mxu0 %vm74_vm0, %v1749_v8 }
  0x8f   :  { %v73_v11 = vpop.permute.xlu0 %72  ;;  %1520 = vmatpush1.bf16.msra.mxu0 %v1519_v4 }
  0x90   :  { %vm76_vm2 = vcmp.eq.s32.totalorder %v66_v61, %v73_v11  ;;  %vm77_vm3 = vcmp.eq.s32.totalorder %v67_v62, %v73_v11  ;;  %1522 = vmatprep.subr.bf16.mxu0 %v1521_v5  ;;  %v500_v11 = vld [vmem:[%s2514_s7 + $0x18] sm:$0xff] }
  0x91   :  { %1288 = vmatprep.mubr.msk.f32.mxu0 %vm77_vm3, %v1749_v8 }
  0x92   :  { %1289 = vmatmul.mubr.msk.f32.gmra.mrb[2].mxu0 %vm76_vm2, %v1749_v8  ;;  %v501_v8 = vld [vmem:[%s2514_s7 + $0x20] sm:$0xff] }
  0x93   :  { %1524 = vmatpush1.bf16.msra.mxu0 %v1523_v12  ;;  %315 = vmatprep.mubr.f32.mxu0 %v1750_v29  ;;  %v1549_v9 = vpack.c.bf16 %v501_v8, %v498_v7  ;;  %v1551_v12 = vpack.c.bf16 %v500_v11, %v497_v10  ;;  %v1296_v7 = vld [vmem:[%s2513_s6] ss:$0 sm:$0xff] }
  0x94   :  { %1526 = vmatprep.subr.bf16.mxu0 %v1525_v13  ;;  %v504_v13 = vld [vmem:[%s2514_s7 + $0x38] sm:$0xff] }
  0x97   :  { %1528 = vmatpush1.bf16.msra.mxu0 %v1527_v16  ;;  %v1553_v16 = vpack.c.bf16 %v507_v14, %v504_v13 }
  0x98   :  { %1530 = vmatprep.subr.bf16.mxu0 %v1529_v20  ;;  %v1565_v20 = vpack.c.bf16 %v502_v17, %v499_v15  ;;  %v769_v17 = vld [vmem:[%s2523_s16 + $0x18] sm:$0xff] }
  0x9a   :  { %1566 = vmatprep.subr.bf16.mxu1 %v1565_v20 }
  0x9b   :  { %1532 = vmatpush1.bf16.msra.mxu0 %v1531_v25  ;;  %v1557_v25 = vpack.c.bf16 %v513_v23, %v510_v22 }
  0x9c   :  { %1550 = vmatprep.subr.bf16.mxu0 %v1549_v9 }
 0x161   :  { %v1341_v30 = vpop.f32.mrb[0].mxu0 }
 0x162   :  { %v1342_v31 = vpop.f32.mrb[1].mxu0 }
 0x163   :  { %v2034_v32 = vadd.f32 %v1342_v31, %v1341_v30  ;;  %v1569_v30 = vpack.c.bf16 %v508_v26, %v505_v24  ;;  %v1559_v31 = vpack.c.bf16 %v512_v28, %v509_v27  ;;  %v770_v24 = vld [vmem:[%s2523_s16 + $0x20] sm:$0xff] }
 0x165   :  { %v1344_v33 = vpop.f32.mrb[2].mxu0  ;;  %1290 = vmatmul.mubr.msk.f32.vlgmr.msra.gmra.mrb[4].mxu0 %vm244_vm4, %v2034_v32  ;;  %1409 = vmatprep.mubr.msk.f32.mxu1 %vm244_vm4, %v2034_v32 }
 0x166   :  { %v1345_v34 = vpop.f32.mrb[3].mxu0  ;;  %321 = vmatprep.mubr.f32.mxu0 %v1750_v29  ;;  %1552 = vmatpush1.bf16.msra.mxu0 %v1551_v12 }
 0x167   :  { %v2041_v35 = vadd.f32 %v1345_v34, %v1344_v33  ;;  %1554 = vmatprep.subr.bf16.mxu0 %v1553_v16  ;;  %v516_v33 = vld [vmem:[%s2514_s7 + $0x98] sm:$0xff]  ;;  %v519_v34 = vld [vmem:[%s2514_s7 + $0xb0] sm:$0xff] }
 0x169   :  { %1291 = vmatmul.mubr.msk.f32.gmra.mrb[6].mxu0 %vm244_vm4, %v2041_v35  ;;  %1410 = vmatmul.mubr.msk.f32.vlgmr.msra.gmra.mrb[0].mxu1 %vm244_vm4, %v2041_v35 }
 0x16a   :  { %591 = vmatprep.mubr.f32.mxu0 %v1750_v29  ;;  %1556 = vmatpush1.bf16.msra.mxu0 %v1555_v21  ;;  %v773_v21 = vld [vmem:[%s2523_s16 + $0x38] sm:$0xff] }
 0x16b   :  { %1568 = vmatpush3.bf16.msra.mxu1 %v1565_v20  ;;  %1558 = vmatprep.subr.bf16.mxu0 %v1557_v25  ;;  %v771_v20 = vld [vmem:[%s2523_s16 + $0x28] sm:$0xff]  ;;  %v772_v25 = vld [vmem:[%s2523_s16 + $0x30] sm:$0xff] }
 0x16c   :  { %1570 = vmatprep.subr.bf16.mxu1 %v1569_v30  ;;  %v1585_v23 = vpack.c.bf16 %v773_v21, %v771_v20  ;;  %v1587_v26 = vpack.c.bf16 %v772_v25, %v770_v24  ;;  %v788_v20 = vld [vmem:[%s2523_s16 + $0xb0] sm:$0xff]  ;;  %v790_v25 = vld [vmem:[%s2523_s16 + $0xc0] sm:$0xff] }
 0x16e   :  { %1560 = vmatpush1.bf16.msra.mxu0 %v1559_v31 }
 0x16f   :  { %1572 = vmatpush3.bf16.msra.mxu1 %v1569_v30 }
 0x238   :  { %v317_v38 = vpop.f32.mrb[4].mxu0 }
 0x239   :  { %v319_v40 = vpop.f32.mrb[5].mxu0  ;;  %v403_v44 = vrot.slane %v317_v38, 6  ;;  %v1561_v38 = vpack.c.bf16 %v519_v34, %v516_v33 }
 0x23a   :  { %v418_v48 = vrot.slane %v319_v40, 7  ;;  %v514_v40 = vld [vmem:[%s2514_s7 + $0x88] sm:$0xff] }
 0x23b   :  { %1562 = vmatprep.subr.bf16.mxu0 %v1561_v38 }
 0x23c   :  { %v323_v42 = vpop.f32.mrb[6].mxu0  ;;  %v1411_v43 = vpop.f32.mrb[0].mxu1 }
 0x23d   :  { %v404_v45 = vrot.slane %v323_v42, 6  ;;  %v325_v46 = vpop.f32.mrb[7].mxu0  ;;  %v394_v47 = vpop.f32.mrb[1].mxu1  ;;  %v515_v42 = vld [vmem:[%s2514_s7 + $0x90] sm:$0xff] }
 0x23e   :  { %v419_v49 = vrot.slane %v325_v46, 7  ;;  %v517_v46 = vld [vmem:[%s2514_s7 + $0xa0] sm:$0xff] }
 0x23f   :  { %v406_v50 = vsel %vm405_vm5, %v403_v44, %v404_v45  ;;  %v407_v51 = vsel %vm405_vm5, %v404_v45, %v403_v44  ;;  %v1573_v44 = vpack.c.bf16 %v514_v40, %v511_v37 }
 0x240   :  { %v415_v52 = vsel %vm409_vm6, %v406_v50, 0.0  ;;  %v421_v53 = vsel %vm420_vm7, %v418_v48, %v419_v49  ;;  %v414_v54 = vsel %vm408_vm8, %v407_v51, 0.0  ;;  %v422_v55 = vsel %vm420_vm7, %v419_v49, %v418_v48 }
 0x241   :  { %v417_v56 = vadd.f32 %v1411_v43, %v415_v52  ;;  %v430_v57 = vsel %vm424_vm9, %v421_v53, 0.0  ;;  %v416_v58 = vadd.f32 %v414_v54, %v394_v47  ;;  %v429_v59 = vsel %vm423_vm10, %v422_v55, 0.0  ;;  %v518_v43 = vld [vmem:[%s2514_s7 + $0xa8] sm:$0xff]  ;;  %1574 = vmatprep.subr.bf16.mxu1 %v1573_v44  ;;  %v520_v47 = vld [vmem:[%s2514_s7 + $0xb8] sm:$0xff] }
 0x242   :  { %v1563_v45 = vpack.c.bf16 %v518_v43, %v515_v42  ;;  %1576 = vmatpush3.bf16.msra.mxu1 %v1573_v44  ;;  %v1577_v48 = vpack.c.bf16 %v520_v47, %v517_v46 }
 0x243   :  { %v431_v61 = vadd.f32 %v429_v59, %v416_v58  ;;  %v432_v62 = vadd.f32 %v430_v57, %v417_v56 }
 0x244   :  { %1564 = vmatpush1.bf16.msra.mxu0 %v1563_v45  ;;  %1578 = vmatprep.subr.bf16.mxu1 %v1577_v48 }
 0x245   :  { %v2074_v63 = vadd.f32 %v1294_v60, %v431_v61  ;;  %v2076_v0 = vadd.f32 %v1294_v60, %v432_v62 }
 0x246   :  { %1580 = vmatpush3.bf16.msra.mxu1 %v1577_v48 }
 0x247   :  { %v442_v1 = vsel %vm244_vm4, %v2074_v63, 0.0  ;;  %v445_v2 = vsel %vm244_vm4, %v2076_v0, 0.0  ;;  %v451_v3 = vmul.f32 %v2074_v63, %v2074_v63  ;;  %v452_v5 = vmul.f32 %v2076_v0, %v2076_v0 }
 0x248   :  { %443 = vadd.xlane.f32.xlu1 %v442_v1  ;;  %446 = vadd.xlane.f32.xlu0 %v445_v2 }
 0x249   :  { %v453_v4 = vsel %vm244_vm4, %v451_v3, 0.0  ;;  %v456_v6 = vsel %vm244_vm4, %v452_v5, 0.0  ;;  %v1295_v5 = vld [vmem:[%s2512_s5] ss:$0 sm:$0xff] }
 0x24c   :  { %454 = vadd.xlane.f32.xlu1 %v453_v4 }
 0x250   :  { %457 = vadd.xlane.f32.xlu1 %v456_v6 }
 0x2d5   :  { %v444_v49 = vpop.xlane.xlu1 %443  ;;  %v447_v51 = vpop.xlane.xlu0 %446 }
 0x2d6   :  { %v449_v50 = vmul.f32 0.015625, %v444_v49  ;;  %v450_v54 = vmul.f32 0.015625, %v447_v51 }
 0x2d8   :  { %v461_v53 = vmul.f32 %v449_v50, %v449_v50  ;;  %v462_v58 = vmul.f32 %v450_v54, %v450_v54  ;;  %v467_v3 = vsub.f32 %v2074_v63, %v449_v50  ;;  %v468_v8 = vsub.f32 %v2076_v0, %v450_v54 }
 0x2d9   :  { %v455_v52 = vpop.xlane.xlu1 %454 }
 0x2da   :  { %v459_v55 = vmul.f32 0.015625, %v455_v52 }
 0x2dc   :  { %v463_v56 = vsub.f32 %v459_v55, %v461_v53  ;;  %v1301_v53 = vld [vmem:[%s2515_s8] ss:$0 sm:$0xff] }
 0x2dd   :  { %v458_v57 = vpop.xlane.xlu1 %457 }
 0x2de   :  { %v465_v59 = vmax.f32 %v463_v56, 0.0  ;;  %v460_v60 = vmul.f32 0.015625, %v458_v57 }
 0x2e0   :  { %v469_v61 = vadd.f32 1e-05, %v465_v59  ;;  %v464_v62 = vsub.f32 %v460_v60, %v462_v58 }
 0x2e2   :  { %1680 = vrsqrt.f32 %v469_v61  ;;  %v466_v1 = vmax.f32 %v464_v62, 0.0  ;;  %v775_v62 = vld [vmem:[%s2523_s16 + $0x48] sm:$0xff] }
 0x2e4   :  { %v470_v2 = vadd.f32 1e-05, %v466_v1  ;;  %v777_v1 = vld [vmem:[%s2523_s16 + $0x58] sm:$0xff] }
 0x2e6   :  { %1682 = vrsqrt.f32 %v470_v2  ;;  %v1589_v2 = vpack.c.bf16 %v777_v1, %v775_v62  ;;  %v895_v1 = vld [vmem:[%s2522_s15 + $0x70] sm:$0xff] }
 0x2ec   :  { %v1681_v4 = vpop.eup %1680 }
 0x2ed   :  { %v473_v6 = vmul.f32 %v1681_v4, %v467_v3  ;;  %v774_v3 = vld [vmem:[%s2523_s16 + $0x40] sm:$0xff]  ;;  %v776_v4 = vld [vmem:[%s2523_s16 + $0x50] sm:$0xff] }
 0x2ef   :  { %v482_v9 = vmul.f32 %v1295_v5, %v473_v6  ;;  %v779_v6 = vld [vmem:[%s2523_s16 + $0x68] sm:$0xff] }
 0x2f0   :  { %v1683_v10 = vpop.eup %1682 }
 0x2f1   :  { %v491_v11 = vadd.f32 %v1296_v7, %v482_v9  ;;  %v474_v12 = vmul.f32 %v1683_v10, %v468_v8  ;;  %v778_v9 = vld [vmem:[%s2523_s16 + $0x60] sm:$0xff]  ;;  %v780_v10 = vld [vmem:[%s2523_s16 + $0x70] sm:$0xff] }
 0x2f3   :  { %v493_v13 = vmax.f32 %v491_v11, 0.0  ;;  %v483_v14 = vmul.f32 %v1295_v5, %v474_v12  ;;  %v1591_v5 = vpack.c.bf16 %v776_v4, %v774_v3  ;;  %v1595_v11 = vpack.c.bf16 %v780_v10, %v778_v9  ;;  %v783_v12 = vld [vmem:[%s2523_s16 + $0x88] sm:$0xff] }
 0x2f4   :  { %v1751_v3 = vmov 0.0|0.0  }
 0x2f5   :  { %v2169_v63 = vadd.f32 %v2034_v32, %v493_v13  ;;  %v492_v15 = vadd.f32 %v1296_v7, %v483_v14  ;;  %v767_v32 = vld [vmem:[%s2523_s16 + $0x8] sm:$0xff]  ;;  %v781_v7 = vld [vmem:[%s2523_s16 + $0x78] sm:$0xff] }
 0x2f6   :  { %v1581_v18 = vpack.c.bf16 %v769_v17, %v767_v32  ;;  %v1593_v8 = vpack.c.bf16 %v781_v7, %v779_v6  ;;  %v785_v13 = vld [vmem:[%s2523_s16 + $0x98] sm:$0xff]  ;;  %v787_v17 = vld [vmem:[%s2523_s16 + $0xa8] sm:$0xff] }
 0x2f7   :  { %1297 = vmatmul.mubr.msk.f32.vlgmr.msra.gmra.mrb[8].mxu0 %vm244_vm4, %v2169_v63  ;;  %1428 = vmatprep.mubr.msk.f32.mxu1 %vm244_vm4, %v2169_v63  ;;  %v494_v16 = vmax.f32 %v492_v15, 0.0  ;;  %v1597_v14 = vpack.c.bf16 %v785_v13, %v783_v12  ;;  %v782_v15 = vld [vmem:[%s2523_s16 + $0x80] sm:$0xff] }
 0x2f8   :  { %597 = vmatprep.mubr.f32.mxu0 %v1750_v29  ;;  %1582 = vmatprep.subr.bf16.mxu0 %v1581_v18 }
 0x2f9   :  { %v2177_v0 = vadd.f32 %v2041_v35, %v494_v16  ;;  %v766_v35 = vld [vmem:[%s2523_s16] sm:$0xff]  ;;  %v784_v16 = vld [vmem:[%s2523_s16 + $0x90] sm:$0xff] }
 0x2fa   :  { %v1583_v22 = vpack.c.bf16 %v768_v19, %v766_v35  ;;  %v1599_v32 = vpack.c.bf16 %v784_v16, %v782_v15  ;;  %v789_v35 = vld [vmem:[%s2523_s16 + $0xb8] sm:$0xff]  ;;  %v786_v19 = vld [vmem:[%s2523_s16 + $0xa0] sm:$0xff] }
 0x2fb   :  { %1298 = vmatmul.mubr.msk.f32.gmra.mrb[10].mxu0 %vm244_vm4, %v2177_v0  ;;  %1429 = vmatmul.mubr.msk.f32.vlgmr.msra.gmra.mrb[2].mxu1 %vm244_vm4, %v2177_v0  ;;  %v1601_v18 = vpack.c.bf16 %v789_v35, %v787_v17  ;;  %v1603_v21 = vpack.c.bf16 %v788_v20, %v786_v19  ;;  %v1302_v20 = vld [vmem:[%s2516_s9] ss:$0 sm:$0xff] }
 0x2fc   :  { %874 = vmatprep.mubr.f32.mxu0 %v1750_v29  ;;  %967 = vmatprep.mubr.f32.mxu1 %v1750_v29 }
 0x2fd   :  { %1584 = vmatpush1.bf16.msra.mxu0 %v1583_v22  ;;  %v791_v22 = vld [vmem:[%s2523_s16 + $0xc8] sm:$0xff] }
 0x2fe   :  { %1586 = vmatprep.subr.bf16.mxu0 %v1585_v23  ;;  %v793_v23 = vld [vmem:[%s2523_s16 + $0xd8] sm:$0xff] }
 0x2ff   :  { %v1605_v24 = vpack.c.bf16 %v793_v23, %v791_v22  ;;  %v1303_v22 = vld [vmem:[%s2517_s10] ss:$0 sm:$0xff] }
 0x301   :  { %1588 = vmatpush1.bf16.msra.mxu0 %v1587_v26  ;;  %v792_v26 = vld [vmem:[%s2523_s16 + $0xd0] sm:$0xff] }
 0x302   :  { %1590 = vmatprep.subr.bf16.mxu0 %v1589_v2 }
 0x305   :  { %1592 = vmatpush1.bf16.msra.mxu0 %v1591_v5 }
 0x306   :  { %1594 = vmatprep.subr.bf16.mxu0 %v1593_v8 }
 0x309   :  { %1596 = vmatpush1.bf16.msra.mxu0 %v1595_v11 }
 0x30a   :  { %1598 = vmatprep.subr.bf16.mxu0 %v1597_v14 }
 0x30d   :  { %1600 = vmatpush1.bf16.msra.mxu0 %v1599_v32 }
 0x30e   :  { %1602 = vmatprep.subr.bf16.mxu0 %v1601_v18 }
 0x311   :  { %1604 = vmatpush1.bf16.msra.mxu0 %v1603_v21 }
 0x312   :  { %1606 = vmatprep.subr.bf16.mxu0 %v1605_v24 }
 0x3ca   :  { %v593_v27 = vpop.f32.mrb[8].mxu0 }
 0x3cb   :  { %v595_v28 = vpop.f32.mrb[9].mxu0  ;;  %v679_v33 = vrot.slane %v593_v27, 4  ;;  %v1607_v27 = vpack.c.bf16 %v792_v26, %v790_v25 }
 0x3cc   :  { %v694_v40 = vrot.slane %v595_v28, 6  ;;  %v882_v28 = vld [vmem:[%s2522_s15 + $0x8] sm:$0xff] }
 0x3cd   :  { %1608 = vmatpush1.bf16.msra.mxu0 %v1607_v27  ;;  %v1065_v27 = vld [vmem:[%s2520_s13] sm:$0xff] }
 0x3ce   :  { %v599_v30 = vpop.f32.mrb[10].mxu0  ;;  %v1430_v31 = vpop.f32.mrb[2].mxu1 }
 0x3cf   :  { %v680_v34 = vrot.slane %v599_v30, 4  ;;  %v601_v37 = vpop.f32.mrb[11].mxu0  ;;  %v670_v38 = vpop.f32.mrb[3].mxu1  ;;  %v884_v30 = vld [vmem:[%s2522_s15 + $0x18] sm:$0xff] }
 0x3d0   :  { %v695_v42 = vrot.slane %v601_v37, 6 }
 0x3d1   :  { %v682_v43 = vsel %vm681_vm11, %v679_v33, %v680_v34  ;;  %v683_v44 = vsel %vm681_vm11, %v680_v34, %v679_v33  ;;  %v881_v33 = vld [vmem:[%s2522_s15] sm:$0xff]  ;;  %v883_v34 = vld [vmem:[%s2522_s15 + $0x10] sm:$0xff] }
 0x3d2   :  { %v691_v45 = vsel %vm685_vm12, %v682_v43, 0.0  ;;  %v696_v46 = vsel %vm405_vm5, %v694_v40, %v695_v42  ;;  %v690_v47 = vsel %vm684_vm13, %v683_v44, 0.0  ;;  %v697_v48 = vsel %vm405_vm5, %v695_v42, %v694_v40  ;;  %v797_v40 = vld [vmem:[%s2523_s16 + $0xf8] sm:$0xff]  ;;  %v794_v43 = vld [vmem:[%s2523_s16 + $0xe0] sm:$0xff]  ;;  %v796_v44 = vld [vmem:[%s2523_s16 + $0xf0] sm:$0xff] }
 0x3d3   :  { %v693_v49 = vadd.f32 %v1430_v31, %v691_v45  ;;  %v699_v50 = vsel %vm409_vm6, %v696_v46, 0.0  ;;  %v692_v51 = vadd.f32 %v690_v47, %v670_v38  ;;  %v698_v52 = vsel %vm408_vm8, %v697_v48, 0.0  ;;  %v795_v38 = vld [vmem:[%s2523_s16 + $0xe8] sm:$0xff]  ;;  %v888_v47 = vld [vmem:[%s2522_s15 + $0x38] sm:$0xff] }
 0x3d4   :  { %v1613_v31 = vpack.c.bf16 %v884_v30, %v882_v28  ;;  %v1615_v37 = vpack.c.bf16 %v883_v34, %v881_v33  ;;  %v1609_v42 = vpack.c.bf16 %v797_v40, %v795_v38  ;;  %v1611_v45 = vpack.c.bf16 %v796_v44, %v794_v43  ;;  %v886_v46 = vld [vmem:[%s2522_s15 + $0x28] sm:$0xff]  ;;  %v1068_v38 = vld [vmem:[%s2520_s13 + $0x18] sm:$0xff]  ;;  %v1069_v43 = vld [vmem:[%s2520_s13 + $0x20] sm:$0xff] }
 0x3d5   :  { %v700_v54 = vadd.f32 %v698_v52, %v692_v51  ;;  %v701_v55 = vadd.f32 %v699_v50, %v693_v49  ;;  %v1617_v48 = vpack.c.bf16 %v888_v47, %v886_v46  ;;  %v885_v49 = vld [vmem:[%s2522_s15 + $0x20] sm:$0xff]  ;;  %v887_v50 = vld [vmem:[%s2522_s15 + $0x30] sm:$0xff]  ;;  %v1070_v44 = vld [vmem:[%s2520_s13 + $0x28] sm:$0xff] }
 0x3d6   :  { %1614 = vmatprep.subr.bf16.mxu1 %v1613_v31  ;;  %1610 = vmatprep.subr.bf16.mxu0 %v1609_v42  ;;  %v1619_v51 = vpack.c.bf16 %v887_v50, %v885_v49  ;;  %v2336_v52 = vld [vmem:[%s2537_s28] sm:$0x3]  ;;  %v1072_v46 = vld [vmem:[%s2520_s13 + $0x38] sm:$0xff]  ;;  %v1074_v49 = vld [vmem:[%s2520_s13 + $0x48] sm:$0xff] }
 0x3d7   :  { %v2223_v56 = vadd.f32 %v1301_v53, %v700_v54  ;;  %v2227_v58 = vadd.f32 %v1301_v53, %v701_v55  ;;  %1616 = vmatpush1.bf16.msra.mxu1 %v1615_v37  ;;  %1612 = vmatpush1.bf16.msra.mxu0 %v1611_v45  ;;  %v890_v53 = vld [vmem:[%s2522_s15 + $0x48] sm:$0xff]  ;;  %v892_v54 = vld [vmem:[%s2522_s15 + $0x58] sm:$0xff]  ;;  %v1636_v45 = vpack.c.bf16 %v1070_v44, %v1069_v43 }
 0x3d8   :  { %1618 = vmatprep.subr.bf16.mxu1 %v1617_v48  ;;  %v1621_v55 = vpack.c.bf16 %v892_v54, %v890_v53  ;;  %v1073_v48 = vld [vmem:[%s2520_s13 + $0x40] sm:$0xff]  ;;  %v1076_v53 = vld [vmem:[%s2520_s13 + $0x58] sm:$0xff] }
 0x3d9   :  { %v711_v57 = vsel %vm244_vm4, %v2223_v56, 0.0  ;;  %v714_v39 = vsel %vm244_vm4, %v2227_v58, 0.0  ;;  %v719_v41 = vmul.f32 %v2223_v56, %v2223_v56  ;;  %v720_v60 = vmul.f32 %v2227_v58, %v2227_v58 }
 0x3da   :  { %712 = vadd.xlane.f32.xlu1 %v711_v57  ;;  %875 = vmatmul.mubr.f32.vlgmr.msra.gmra.mrb[12].mxu0 %v2336_v52  ;;  %v889_v57 = vld [vmem:[%s2522_s15 + $0x40] sm:$0xff]  ;;  %v1642_v50 = vpack.c.bf16 %v1074_v49, %v1073_v48 }
 0x3db   :  { %v721_v59 = vsel %vm244_vm4, %v719_v41, 0.0  ;;  %v724_v61 = vsel %vm244_vm4, %v720_v60, 0.0  ;;  %1620 = vmatpush1.bf16.msra.mxu1 %v1619_v51  ;;  %v896_v60 = vld [vmem:[%s2522_s15 + $0x78] sm:$0xff]  ;;  %v1075_v51 = vld [vmem:[%s2520_s13 + $0x50] sm:$0xff] }
 0x3dc   :  { %1622 = vmatprep.subr.bf16.mxu1 %v1621_v55  ;;  %v1645_v54 = vpack.c.bf16 %v1076_v53, %v1075_v51  ;;  %v1077_v55 = vld [vmem:[%s2520_s13 + $0x60] sm:$0xff] }
 0x3de   :  { %715 = vadd.xlane.f32.xlu1 %v714_v39  ;;  %v891_v39 = vld [vmem:[%s2522_s15 + $0x50] sm:$0xff] }
 0x3df   :  { %v1623_v41 = vpack.c.bf16 %v891_v39, %v889_v57  ;;  %v1078_v57 = vld [vmem:[%s2520_s13 + $0x68] sm:$0xff] }
 0x3e0   :  { %v1648_v39 = vpack.c.bf16 %v1078_v57, %v1077_v55 }
 0x3e1   :  { %1624 = vmatpush1.bf16.msra.mxu1 %v1623_v41  ;;  %v1079_v41 = vld [vmem:[%s2520_s13 + $0x70] sm:$0xff] }
 0x3e2   :  { %722 = vadd.xlane.f32.xlu1 %v721_v59  ;;  %v894_v59 = vld [vmem:[%s2522_s15 + $0x68] sm:$0xff] }
 0x3e3   :  { %v1625_v62 = vpack.c.bf16 %v896_v60, %v894_v59  ;;  %v1080_v59 = vld [vmem:[%s2520_s13 + $0x78] sm:$0xff] }
 0x3e4   :  { %v1651_v60 = vpack.c.bf16 %v1080_v59, %v1079_v41 }
 0x3e5   :  { %1626 = vmatprep.subr.bf16.mxu1 %v1625_v62  ;;  %v1159_v62 = vld [vmem:[%s2518_s11 + $0x8] sm:$0xff] }
 0x3e6   :  { %725 = vadd.xlane.f32.xlu1 %v724_v61  ;;  %v893_v61 = vld [vmem:[%s2522_s15 + $0x60] sm:$0xff] }
 0x3e7   :  { %v1627_v2 = vpack.c.bf16 %v895_v1, %v893_v61  ;;  %v1158_v61 = vld [vmem:[%s2518_s11] sm:$0xff] }
 0x3e8   :  { %v1654_v1 = vpack.c.bf16 %v1159_v62, %v1158_v61 }
 0x3e9   :  { %1628 = vmatpush1.bf16.msra.mxu1 %v1627_v2  ;;  %v1160_v2 = vld [vmem:[%s2518_s11 + $0x10] sm:$0xff] }
 0x3ea   :  { %1629 = vmatprep.subr.bf16.mxu1 %v1751_v3 }
 0x467   :  { %v713_v4 = vpop.xlane.xlu1 %712 }
 0x468   :  { %v717_v6 = vmul.f32 0.015625, %v713_v4  ;;  %v1161_v4 = vld [vmem:[%s2518_s11 + $0x18] sm:$0xff] }
 0x46a   :  { %v729_v8 = vmul.f32 %v717_v6, %v717_v6  ;;  %v735_v18 = vsub.f32 %v2223_v56, %v717_v6  ;;  %v1066_v56 = vld [vmem:[%s2520_s13 + $0x8] sm:$0xff]  ;;  %v1162_v6 = vld [vmem:[%s2518_s11 + $0x20] sm:$0xff] }
 0x46b   :  { %v716_v5 = vpop.xlane.xlu1 %715  ;;  %v1630_v33 = vpack.c.bf16 %v1066_v56, %v1065_v27 }
 0x46c   :  { %v718_v9 = vmul.f32 0.015625, %v716_v5  ;;  %v1657_v5 = vpack.c.bf16 %v1161_v4, %v1160_v2 }
 0x46e   :  { %v730_v13 = vmul.f32 %v718_v9, %v718_v9  ;;  %v736_v23 = vsub.f32 %v2227_v58, %v718_v9  ;;  %v1067_v58 = vld [vmem:[%s2520_s13 + $0x10] sm:$0xff] }
 0x46f   :  { %v723_v7 = vpop.xlane.xlu1 %722  ;;  %v1633_v42 = vpack.c.bf16 %v1068_v38, %v1067_v58 }
 0x470   :  { %v727_v10 = vmul.f32 0.015625, %v723_v7  ;;  %v1163_v7 = vld [vmem:[%s2518_s11 + $0x28] sm:$0xff] }
 0x472   :  { %v731_v11 = vsub.f32 %v727_v10, %v729_v8  ;;  %v1660_v8 = vpack.c.bf16 %v1163_v7, %v1162_v6 }
 0x473   :  { %v726_v12 = vpop.xlane.xlu1 %725 }
 0x474   :  { %v733_v14 = vmax.f32 %v731_v11, 0.0  ;;  %v728_v15 = vmul.f32 0.015625, %v726_v12 }
 0x476   :  { %v737_v16 = vadd.f32 1e-05, %v733_v14  ;;  %v732_v32 = vsub.f32 %v728_v15, %v730_v13  ;;  %v802_v13 = vsub.s32 0, %v2049_v36  ;;  %v798_v14 = vld [vmem:[%s2524_s17] sm:$0x3]  ;;  %v806_v15 = vsub.s32 1, %v2049_v36 }
 0x478   :  { %1684 = vrsqrt.f32 %v737_v16  ;;  %v734_v17 = vmax.f32 %v732_v32, 0.0  ;;  %v803_v16 = vrot.slane %v798_v14, %v802_v13  ;;  %v807_v32 = vrot.slane %v798_v14, %v806_v15 }
 0x47a   :  { %v738_v35 = vadd.f32 1e-05, %v734_v17 }
 0x47c   :  { %1686 = vrsqrt.f32 %v738_v35 }
 0x482   :  { %v1685_v19 = vpop.eup %1684 }
 0x483   :  { %v741_v21 = vmul.f32 %v1685_v19, %v735_v18 }
 0x485   :  { %v750_v24 = vmul.f32 %v1302_v20, %v741_v21 }
 0x486   :  { %v1687_v25 = vpop.eup %1686 }
 0x487   :  { %v759_v26 = vadd.f32 %v1303_v22, %v750_v24  ;;  %v742_v28 = vmul.f32 %v1687_v25, %v736_v23 }
 0x489   :  { %v761_v30 = vmax.f32 %v759_v26, 0.0  ;;  %v751_v31 = vmul.f32 %v1302_v20, %v742_v28  ;;  %v1753_v20 = vmov 1966171168  }
 0x48a   :  { %v984_v21 = vunpack.c.l.s4 %v1753_v20 }
 0x48b   :  { %v2379_v34 = vadd.f32 %v761_v30, %v2169_v63  ;;  %v760_v37 = vadd.f32 %v1303_v22, %v751_v31 }
 0x48c   :  { %v985_v22 = vunpack.c.0.s8 %v984_v21 }
 0x48d   :  { %1304 = vmatmul.mubr.msk.f32.vlgmr.msra.gmra.mrb[4].mxu1 %vm244_vm4, %v2379_v34  ;;  %v762_v40 = vmax.f32 %v760_v37, 0.0  ;;  %v1173_v11 = vrot.slane %v2379_v34, 7 }
 0x48e   :  { %1631 = vmatpush3.bf16.msra.mxu1 %v1630_v33  ;;  %973 = vmatprep.mubr.f32.mxu1 %v1750_v29  ;;  %v988_v23 = vsub.s32 %v985_v22, %v2049_v36  ;;  %v1306_v36 = vld [vmem:[%s2521_s14] ss:$0 sm:$0xff] }
 0x48f   :  { %1632 = vmatprep.subr.bf16.mxu1 %v1751_v3  ;;  %v764_v63 = vadd.f32 %v762_v40, %v2177_v0  ;;  %v1071_v0 = vld [vmem:[%s2520_s13 + $0x30] sm:$0xff] }
 0x490   :  { %v1639_v47 = vpack.c.bf16 %v1072_v46, %v1071_v0 }
 0x491   :  { %1305 = vmatmul.mubr.msk.f32.gmra.mrb[6].mxu1 %vm244_vm4, %v764_v63  ;;  %v1174_v10 = vrot.slane %v764_v63, 6 }
 0x492   :  { %1634 = vmatpush3.bf16.msra.mxu1 %v1633_v42  ;;  %1463 = vmatprep.mubr.msk.f32.mxu1 %vm1752_vm14, %v1750_v29 }
 0x493   :  { %1635 = vmatprep.subr.bf16.mxu1 %v1751_v3  ;;  %v1176_v12 = vsel %vm1175_vm15, %v1174_v10, %v1173_v11 }
 0x496   :  { %1637 = vmatpush3.bf16.msra.mxu1 %v1636_v45  ;;  %v1307_v45 = vld [vmem:[%s2519_s12] ss:$0 sm:$0xff]  ;;  %s1754_s12 = smov [#allocation4]  }
 0x497   :  { %1638 = vmatprep.subr.bf16.mxu1 %v1751_v3  ;;  %v1665_v0 = vadd.f32 %v1307_v45, %v1306_v36  ;;  %s1270_s14 = sshll.u32 %s1754_s12, 4  ;;  %s1271_s14 = int_to_ptr.vmem [resolvable:$true] %s1270_s14 }
 0x498   :  { %s1700_s0 = scalar_lea.vmem %s1271_s14, 32  ;;  %p1705_p1 = scmp.lt.s32.totalorder %s1271_s14, %s1271_s14 }
 0x499   :  { %p1701_p0 = scmp.ne.s32.totalorder %s1271_s14, %s1700_s0  ;;  %p1706_p2 = scmp.lt.s32.totalorder %s1700_s0, %s1700_s0 }
 0x49a   :  { %1640 = vmatpush3.bf16.msra.mxu1 %v1639_v47 }
 0x49b   :  { %1641 = vmatprep.subr.bf16.mxu1 %v1751_v3  ;;  %p1707_p3 = por %p1706_p2, %p1705_p1 }
 0x49d   :  { %p1708_p4 = pnand %p1707_p3, %p1701_p0 }
 0x49e   :  { %1643 = vmatpush3.bf16.msra.mxu1 %v1642_v50 }
 0x49f   :  { %1644 = vmatprep.subr.bf16.mxu1 %v1751_v3 }
 0x4a2   :  { %1646 = vmatpush3.bf16.msra.mxu1 %v1645_v54 }
 0x4a3   :  { %1647 = vmatprep.subr.bf16.mxu1 %v1751_v3 }
 0x4a6   :  { %1649 = vmatpush3.bf16.msra.mxu1 %v1648_v39 }
 0x4a7   :  { %1650 = vmatprep.subr.bf16.mxu1 %v1751_v3 }
 0x4aa   :  { %1652 = vmatpush3.bf16.msra.mxu1 %v1651_v60 }
 0x4ab   :  { %1653 = vmatprep.subr.bf16.mxu1 %v1751_v3 }
 0x4ad   :  { %1464 = vmatmul.mubr.f32.vlgmr.msra.gmra.mrb[8].mxu1 %v2336_v52  ;;  %v1164_v52 = vld [vmem:[%s2518_s11 + $0x30] sm:$0xff]  ;;  %v876_v17 = vpop.f32.mrb[12].mxu0 }
 0x4ae   :  { %1655 = vmatpush3.bf16.msra.mxu1 %v1654_v1  ;;  %1482 = vmatprep.mubr.msk.f32.mxu1 %vm1752_vm14, %v1750_v29  ;;  %v1165_v29 = vld [vmem:[%s2518_s11 + $0x38] sm:$0xff]  ;;  %v878_v35 = vpop.f32.mrb[13].mxu0 }
 0x4af   :  { %1656 = vmatprep.subr.bf16.mxu1 %v1751_v3  ;;  %v1663_v9 = vpack.c.bf16 %v1165_v29, %v1164_v52  ;;  %v879_v18 = vadd.f32 %v878_v35, %v807_v32 }
 0x4b2   :  { %1658 = vmatpush3.bf16.msra.mxu1 %v1657_v5 }
 0x4b3   :  { %1659 = vmatprep.subr.bf16.mxu1 %v1751_v3 }
 0x4b6   :  { %1661 = vmatpush3.bf16.msra.mxu1 %v1660_v8 }
 0x4b7   :  { %1662 = vmatprep.subr.bf16.mxu1 %v1751_v3  ;;  %v877_v3 = vadd.f32 %v876_v17, %v803_v16 }
 0x4b9   :  { %v982_v19 = vcombine.low %v877_v3, %v879_v18 }
 0x4ba   :  { %1664 = vmatpush3.bf16.msra.mxu1 %v1663_v9 }
 0x4bb   :  { %v989_v24 = vrot.slane %v982_v19, %v988_v23 }
 0x4bd   :  { %1483 = vmatmul.mubr.msk.f32.vlgmr.msra.gmra.mrb[8].mxu1 %vm244_vm4, %v1176_v12  ;;  %v997_v25 = vrot.slane %v989_v24, %v988_v23  ;;  %v990_v26 = vcombine.high %v989_v24, %v989_v24 }
 0x4bf   :  { %v1008_v27 = vrot.slane %v997_v25, %v802_v13  ;;  %v1012_v56 = vrot.slane %v997_v25, %v806_v15  ;;  %v1004_v28 = vrot.slane %v990_v26, %v988_v23 }
 0x4c1   :  { %v1016_v37 = vrot.slane %v1004_v28, %v802_v13  ;;  %v1020_v38 = vrot.slane %v1004_v28, %v806_v15 }
 0x560   :  { %v969_v30 = vpop.f32.mrb[4].mxu1 }
 0x561   :  { %v1025_v31 = vadd.f32 %v1008_v27, %v969_v30  ;;  %v971_v33 = vpop.f32.mrb[5].mxu1 }
 0x562   :  { %v1026_v34 = vadd.f32 %v1012_v56, %v971_v33 }
 0x564   :  { %v975_v58 = vpop.f32.mrb[6].mxu1  ;;  %v1029_v40 = vmax.f32 %v1025_v31, %v1026_v34 }
 0x565   :  { %v1027_v42 = vadd.f32 %v1016_v37, %v975_v58  ;;  %v977_v63 = vpop.f32.mrb[7].mxu1 }
 0x566   :  { %v1028_v43 = vadd.f32 %v1020_v38, %v977_v63  ;;  %1030 = vmax.xlane.f32.xlu1 %v1029_v40 }
 0x568   :  { %v1032_v44 = vmax.f32 %v1027_v42, %v1028_v43 }
 0x56a   :  { %1033 = vmax.xlane.f32.xlu1 %v1032_v44 }
 0x590   :  { %v1245_v46 = vpop.f32.mrb[8].mxu1 }
 0x591   :  { %v1666_v47 = vadd.f32 %v1665_v0, %v1245_v46  ;;  %v1484_v48 = vpop.f32.mrb[9].mxu1 }
 0x593   :  { %v1250_v49 = vsel %vm244_vm4, %v1666_v47, 0.0 }
 0x594   :  { %1251 = vst [vmem:[#allocation4] sm:$0x3] %v1250_v49 }
 0x5f3   :  { %v1031_v50 = vpop.xlane.xlu1 %1030 }
 0x5f4   :  { %v1035_v51 = vsub.f32 %v1025_v31, %v1031_v50  ;;  %v1036_v53 = vsub.f32 %v1026_v34, %v1031_v50 }
 0x5f6   :  { %v1039_v54 = vmul.f32 1.442695, %v1035_v51  ;;  %v1041_v55 = vmul.f32 1.442695, %v1036_v53 }
 0x5f7   :  { %v1034_v57 = vpop.xlane.xlu1 %1033 }
 0x5f8   :  { %1688 = vpow2.f32 %v1039_v54  ;;  %v1037_v39 = vsub.f32 %v1027_v42, %v1034_v57  ;;  %v1038_v41 = vsub.f32 %v1028_v43, %v1034_v57 }
 0x5f9   :  { %1690 = vpow2.f32 %v1041_v55 }
 0x5fa   :  { %v1043_v59 = vmul.f32 1.442695, %v1037_v39  ;;  %v1045_v60 = vmul.f32 1.442695, %v1038_v41 }
 0x5fc   :  { %1692 = vpow2.f32 %v1043_v59 }
 0x5fd   :  { %1694 = vpow2.f32 %v1045_v60 }
 0x602   :  { %v1689_v61 = vpop.eup %1688 }
 0x603   :  { %v1691_v62 = vpop.eup %1690 }
 0x604   :  { %v1047_v1 = vadd.f32 %v1691_v62, %v1689_v61 }
 0x606   :  { %v1693_v2 = vpop.eup %1692  ;;  %1048 = vadd.xlane.f32.xlu1 %v1047_v1 }
 0x607   :  { %v1695_v4 = vpop.eup %1694 }
 0x608   :  { %v1050_v5 = vadd.f32 %v1695_v4, %v1693_v2 }
 0x60a   :  { %1051 = vadd.xlane.f32.xlu0 %v1050_v5 }
 0x60b   :  { %1711 = shalt.err (!%p1708_p4)
}
 0x60c   :  { %s1712_s22 = scalar_lea.hbm %s2526_s19, 32 }
 0x60d   :  { %p1713_p5 = scmp.ne.s32.totalorder %s2526_s19, %s1712_s22  ;;  %p1716_p6 = scmp.lt.u32.totalorder %s1712_s22, %s2526_s19 }
 0x60f   :  { %p1718_p7 = pnand %p1716_p6, %p1713_p5 }
 0x611   :  { %1721 = shalt.err (!%p1718_p7)
}
 0x612   :  { %1273 = dma.vmem_to_hbm [thread:$0]  %s1271_s14, 32, %s2526_s19, [#allocation5]  }
 0x613   :  { %s1755_s30 = smov [#allocation2]  }
 0x614   :  { %s1257_s13 = sshll.u32 %s1755_s30, 4  ;;  %s1258_s13 = int_to_ptr.vmem [resolvable:$true] %s1257_s13 }
 0x615   :  { %s1722_s19 = scalar_lea.vmem %s1258_s13, 512  ;;  %p1727_p9 = scmp.lt.s32.totalorder %s1258_s13, %s1258_s13 }
 0x616   :  { %p1723_p8 = scmp.ne.s32.totalorder %s1258_s13, %s1722_s19  ;;  %p1728_p10 = scmp.lt.s32.totalorder %s1722_s19, %s1722_s19 }
 0x618   :  { %p1729_p11 = por %p1728_p10, %p1727_p9 }
 0x61a   :  { %p1730_p12 = pnand %p1729_p11, %p1723_p8 }
 0x693   :  { %v1049_v6 = vpop.xlane.xlu1 %1048 }
 0x694   :  { %1696 = vlog2.f32 %v1049_v6 }
 0x697   :  { %v1052_v7 = vpop.xlane.xlu0 %1051 }
 0x698   :  { %1698 = vlog2.f32 %v1052_v7 }
 0x69e   :  { %v1697_v8 = vpop.eup %1696 }
 0x69f   :  { %v1054_v52 = vmul.f32 0.6931472, %v1697_v8 }
 0x6a1   :  { %v1057_v29 = vsub.f32 %v1035_v51, %v1054_v52  ;;  %v1058_v9 = vsub.f32 %v1036_v53, %v1054_v52 }
 0x6a2   :  { %v1699_v10 = vpop.eup %1698 }
 0x6a3   :  { %1061 = vst [vmem:[#allocation2] sm:$0xff] %v1057_v29  ;;  %1062 = vst [vmem:[#allocation2 + $0x8] sm:$0xff] %v1058_v9  ;;  %v1056_v11 = vmul.f32 0.6931472, %v1699_v10 }
 0x6a5   :  { %v1059_v12 = vsub.f32 %v1037_v39, %v1056_v11  ;;  %v1060_v13 = vsub.f32 %v1038_v41, %v1056_v11 }
 0x6a7   :  { %1063 = vst [vmem:[#allocation2 + $0x10] sm:$0xff] %v1059_v12  ;;  %1064 = vst [vmem:[#allocation2 + $0x18] sm:$0xff] %v1060_v13 }
 0x6a8   :  { %1733 = shalt.err (!%p1730_p12)
}
 0x6a9   :  { %s1734_s4 = scalar_lea.hbm %s2525_s18, 512 }
 0x6aa   :  { %p1735_p13 = scmp.ne.s32.totalorder %s2525_s18, %s1734_s4  ;;  %p1738_p0 = scmp.lt.u32.totalorder %s1734_s4, %s2525_s18 }
 0x6ac   :  { %p1740_p1 = pnand %p1738_p0, %p1735_p13 }
 0x6ae   :  { %1743 = shalt.err (!%p1740_p1)
}
 0x6af   :  { %s1756_s5 = smov 256   ;;  %s1757_s6 = smov 16  }
 0x6b0   :  { %1263 = dma.vmem_to_hbm [thread:$0]  %s1258_s13, 512, %s2525_s18, [#allocation3], %s1756_s5, %s1756_s5, %s1757_s6  }
 0x6b1   :  { %1744 = dma.done.wait [#allocation3], 512  }
 0x6b2   :  { %1745 = vsyncadd [#allocation3], 4294966784 }
 0x6b3   :  { %1746 = dma.done.wait [#allocation5], 32  }
 0x6b4   :  { %1747 = vsyncadd [#allocation5], 4294967264 }
 0x6b5   :  { %1280 = vsyncpa [#allocation3], 1 }
 0x6b6   :  { %1281 = vsyncpa [#allocation5], 1 }

</bundles_post_ra>
